<compile_context>
chip_gen: v7x
topology: tpu7x:2x2x1
jax: 0.10.0
libtpu: 0.0.40
codegen_flags: <defaults>
</compile_context>

<pallas_src>
import functools
import math

import jax
import jax.numpy as jnp
from jax import lax
from jax.experimental import pallas as pl
from jax.experimental.pallas import tpu as pltpu

_LANES = 128


def _dgi_kernel(feat_ref, w_enc_ref, w_enc_t_ref, w_disc_t_ref, loss_ref,
                colsum_ref, u_ref, acc_ref, *, n_nodes):
    p = pl.program_id(0)          # phase: 0 = feature-mean sweep, 1 = score sweep
    i = pl.program_id(1)          # node-tile index
    nt = pl.num_programs(1)

    tile_r, lanes, f_dim = feat_ref.shape   # static block shape
    tile_n = tile_r * lanes

    # Stream tile; compute in f32 (inputs may be bf16 for bandwidth).
    x = feat_ref[...].astype(jnp.float32)   # (tile_r, 128, F)

    # ---- init (very first grid step) -------------------------------------
    @pl.when((p == 0) & (i == 0))
    def _init():
        colsum_ref[...] = jnp.zeros_like(colsum_ref)
        acc_ref[...] = jnp.zeros_like(acc_ref)

    # ---- phase 0: accumulate column sum of features (for the summary) ----
    @pl.when(p == 0)
    def _mean_pass():
        x2 = x.reshape(tile_n, f_dim)                            # free view
        colsum_ref[...] += jnp.sum(x2, axis=0, keepdims=True)    # (1, F)

    # ---- phase boundary: fold encoder + discriminator into one F-vector --
    @pl.when((p == 1) & (i == 0))
    def _make_u():
        m = colsum_ref[...] * jnp.float32(1.0 / n_nodes)         # (1, F) mean feature
        z = jnp.dot(m, w_enc_ref[...],
                    preferred_element_type=jnp.float32)          # (1, H)
        s = jax.nn.sigmoid(z)                                    # summary (1, H)
        t = jnp.dot(s, w_disc_t_ref[...],
                    preferred_element_type=jnp.float32)          # (1, H) = (W_disc @ s)^T
        u_ref[...] = jnp.dot(t, w_enc_t_ref[...],
                             preferred_element_type=jnp.float32)  # (1, F) = (W_enc @ W_disc @ s)^T

    # ---- phase 1: lane-dense scores + softplus reduction ------------------
    @pl.when(p == 1)
    def _score_pass():
        u3 = u_ref[...].reshape(1, 1, f_dim)
        score = jnp.sum(x * u3, axis=-1)                         # (tile_r, 128), lane-dense
        a = jnp.abs(score)
        # softplus(s) + softplus(-s) == |s| + 2*log(1 + exp(-|s|))   (stable)
        per_node = a + 2.0 * jnp.log(1.0 + jnp.exp(-a))
        # Mask padded rows (N was padded up to a tile multiple with zeros).
        r_idx = lax.broadcasted_iota(jnp.int32, (tile_r, lanes), 0)
        l_idx = lax.broadcasted_iota(jnp.int32, (tile_r, lanes), 1)
        gidx = i * tile_n + r_idx * lanes + l_idx
        per_node = jnp.where(gidx < n_nodes, per_node, 0.0)
        part = jnp.sum(per_node, axis=-1, keepdims=True)         # (tile_r, 1)
        acc_ref[...] += jnp.sum(part, axis=0, keepdims=True)     # (1, 1)

    # ---- finalize ----------------------------------------------------------
    @pl.when((p == 1) & (i == nt - 1))
    def _finalize():
        loss_ref[0, 0] = jnp.sum(acc_ref[...]) * jnp.float32(1.0 / n_nodes)


def dgi_loss(feat, w_enc, w_disc, *, tile_n=2048):
    """DGI objective (linear encoder stand-in). Returns a scalar f32 loss.

    feat  : (N, F) node features (f32 or bf16)
    w_enc : (F, H) linear encoder stand-in weight (f32)
    w_disc: (H, H) discriminator weight (f32)
    """
    n, f = feat.shape
    f2, h = w_enc.shape
    assert f2 == f and w_disc.shape == (h, h)

    # Tile size: multiple of 128 rows, >= 128, <= padded N.
    tile_n = max(_LANES, (min(tile_n, max(n, _LANES)) // _LANES) * _LANES)
    n_pad = pl.cdiv(n, tile_n) * tile_n
    if n_pad != n:
        feat = jnp.pad(feat, ((0, n_pad - n), (0, 0)))
    feat3 = feat.reshape(n_pad // _LANES, _LANES, f)   # free row-major view
    tile_r = tile_n // _LANES
    num_tiles = n_pad // tile_n

    w_enc = w_enc.astype(jnp.float32)
    w_disc = w_disc.astype(jnp.float32)

    kernel = functools.partial(_dgi_kernel, n_nodes=n)

    grid_spec = pltpu.PrefetchScalarGridSpec(
        num_scalar_prefetch=0,
        grid=(2, num_tiles),                       # (phase, node-tile)
        in_specs=[
            pl.BlockSpec((tile_r, _LANES, f), lambda p, i: (i, 0, 0)),   # feat tiles
            pl.BlockSpec((f, h), lambda p, i: (0, 0)),                   # W_enc
            pl.BlockSpec((h, f), lambda p, i: (0, 0)),                   # W_enc^T
            pl.BlockSpec((h, h), lambda p, i: (0, 0)),                   # W_disc^T
        ],
        out_specs=pl.BlockSpec((1, 1), lambda p, i: (0, 0),
                               memory_space=pltpu.MemorySpace.SMEM),
        scratch_shapes=[
            pltpu.VMEM((1, f), jnp.float32),   # feature column-sum
            pltpu.VMEM((1, f), jnp.float32),   # folded vector u
            pltpu.VMEM((1, 1), jnp.float32),   # loss accumulator
        ],
    )

    out = pl.pallas_call(
        kernel,
        grid_spec=grid_spec,
        out_shape=jax.ShapeDtypeStruct((1, 1), jnp.float32),
        compiler_params=pltpu.CompilerParams(
            dimension_semantics=("arbitrary", "arbitrary")),
    )(feat3, w_enc, w_enc.T, w_disc.T)
    return out[0, 0]


def dgi_loss_ref(feat, feat_perm, w_enc, w_disc):
    """Pure-JAX reference mirroring the PyTorch semantics (explicit neg branch)."""
    pos = feat @ w_enc
    neg = feat_perm @ w_enc
    summary = jax.nn.sigmoid(jnp.mean(pos, axis=0))        # (H,)
    ws = w_disc @ summary                                  # (H,)
    pos_score = pos @ ws                                   # (N,)
    neg_score = neg @ ws                                   # (N,)
    return (jnp.mean(jax.nn.softplus(-pos_score))
            + jnp.mean(jax.nn.softplus(neg_score)))


if __name__ == "__main__":
    N, F, H = 600, 64, 32  # nodes (not a tile multiple, exercises masking), feat, hidden

    key = jax.random.PRNGKey(0)
    k_feat, k_perm, k_enc, k_disc = jax.random.split(key, 4)

    feat = jax.random.normal(k_feat, (N, F), dtype=jnp.float32)

    # torch.randperm(...) corruption — used only by the reference; the kernel
    # folds the negative branch away analytically (linear encoder stand-in).
    perm = jax.random.permutation(k_perm, N)
    feat_perm = feat[perm]

    enc_bound = 1.0 / math.sqrt(F)
    w_enc = jax.random.uniform(k_enc, (F, H), jnp.float32, -enc_bound, enc_bound)
    disc_bound = 1.0 / math.sqrt(H)   # Discriminator.reset_parameters()
    w_disc = jax.random.uniform(k_disc, (H, H), jnp.float32, -disc_bound, disc_bound)

    # f32 run (tight check against reference).
    loss = jax.block_until_ready(dgi_loss(feat, w_enc, w_disc, tile_n=256))
    ref = jax.block_until_ready(dgi_loss_ref(feat, feat_perm, w_enc, w_disc))
    assert jnp.isfinite(loss), loss
    assert abs(float(loss) - float(ref)) < 1e-4, (float(loss), float(ref))

    # bf16 feature streaming (halves HBM bytes; f32 accumulation in-kernel).
    loss_bf16 = jax.block_until_ready(
        dgi_loss(feat.astype(jnp.bfloat16), w_enc, w_disc, tile_n=256))
    assert jnp.isfinite(loss_bf16), loss_bf16
    assert abs(float(loss_bf16) - float(ref)) < 5e-2 * max(1.0, abs(float(ref))), (
        float(loss_bf16), float(ref))

    print("KERNEL_OK")
</pallas_src>

<mosaic_0001>
module attributes {stable_mosaic.version = 11 : i64} {
  func.func @_dgi_kernel(%arg0: i32, %arg1: i32, %arg2: memref<2x128x64xf32, #tpu.memory_space<vmem>>, %arg3: memref<64x32xf32, #tpu.memory_space<vmem>>, %arg4: memref<32x64xf32, #tpu.memory_space<vmem>>, %arg5: memref<32x32xf32, #tpu.memory_space<vmem>>, %arg6: memref<1x1xf32, #tpu.memory_space<smem>>, %arg7: memref<1x64xf32, #tpu.memory_space<vmem>>, %arg8: memref<1x64xf32, #tpu.memory_space<vmem>>, %arg9: memref<1x1xf32, #tpu.memory_space<vmem>>) attributes {dimension_semantics = [#tpu.dimension_semantics<arbitrary>, #tpu.dimension_semantics<arbitrary>], iteration_bounds = array<i64: 2, 3>, scalar_prefetch = 0 : i64, scratch_operands = 3 : i64, tpu.core_type = #tpu.core_type<tc>, window_params = [{transform_indices = @transform_0, window_bounds = array<i64: 2, 128, 64>}, {pipeline_mode = #tpu.pipeline_mode<synchronous>, transform_indices = @transform_1, window_bounds = array<i64: 64, 32>}, {pipeline_mode = #tpu.pipeline_mode<synchronous>, transform_indices = @transform_2, window_bounds = array<i64: 32, 64>}, {pipeline_mode = #tpu.pipeline_mode<synchronous>, transform_indices = @transform_3, window_bounds = array<i64: 32, 32>}, {transform_indices = @transform_4, window_bounds = array<i64: 1, 1>}]} {
    %c0 = arith.constant 0 : index
    %c0_0 = arith.constant 0 : index
    %c0_1 = arith.constant 0 : index
    %0 = vector.load %arg2[%c0, %c0_0, %c0_1] : memref<2x128x64xf32, #tpu.memory_space<vmem>>, vector<2x128x64xf32>
    %c0_i32 = arith.constant 0 : i32
    %1 = arith.cmpi eq, %arg0, %c0_i32 : i32
    %c0_i32_2 = arith.constant 0 : i32
    %2 = arith.cmpi eq, %arg1, %c0_i32_2 : i32
    %3 = arith.andi %1, %2 : i1
    %4 = arith.extui %3 : i1 to i32
    %c0_i32_3 = arith.constant 0 : i32
    %5 = arith.cmpi ne, %4, %c0_i32_3 : i32
    scf.if %5 {
      %cst = arith.constant 0.000000e+00 : f32
      %22 = vector.broadcast %cst : f32 to vector<1x64xf32>
      %c0_12 = arith.constant 0 : index
      %c0_13 = arith.constant 0 : index
      %23 = vector.load %arg7[%c0_12, %c0_13] : memref<1x64xf32, #tpu.memory_space<vmem>>, vector<1x64xf32>
      tpu.vector_store %arg7[%c0_12, %c0_13], %22 {strides = array<i32>} : memref<1x64xf32, #tpu.memory_space<vmem>>, vector<1x64xf32>,
      %cst_14 = arith.constant 0.000000e+00 : f32
      %24 = vector.broadcast %cst_14 : f32 to vector<1x1xf32>
      %c0_15 = arith.constant 0 : index
      %c0_16 = arith.constant 0 : index
      %25 = vector.load %arg9[%c0_15, %c0_16] : memref<1x1xf32, #tpu.memory_space<vmem>>, vector<1x1xf32>
      tpu.vector_store %arg9[%c0_15, %c0_16], %24 {strides = array<i32>} : memref<1x1xf32, #tpu.memory_space<vmem>>, vector<1x1xf32>,
    } else {
    }
    %c0_i32_4 = arith.constant 0 : i32
    %6 = arith.cmpi eq, %arg0, %c0_i32_4 : i32
    %7 = arith.extui %6 : i1 to i32
    %c0_i32_5 = arith.constant 0 : i32
    %8 = arith.cmpi ne, %7, %c0_i32_5 : i32
    scf.if %8 {
      %22 = vector.shape_cast %0 : vector<2x128x64xf32> to vector<256x64xf32>
      %c0_12 = arith.constant 0 : index
      %c0_13 = arith.constant 0 : index
      %23 = vector.load %arg7[%c0_12, %c0_13] : memref<1x64xf32, #tpu.memory_space<vmem>>, vector<1x64xf32>
      %cst = arith.constant dense<0.000000e+00> : vector<64xf32>
      %24 = vector.multi_reduction <add>, %22, %cst [0] : vector<256x64xf32> to vector<64xf32>
      %25 = vector.shape_cast %24 : vector<64xf32> to vector<1x64xf32>
      %26 = arith.addf %23, %25 : vector<1x64xf32>
      %c0_14 = arith.constant 0 : index
      %c0_15 = arith.constant 0 : index
      %27 = vector.load %arg7[%c0_14, %c0_15] : memref<1x64xf32, #tpu.memory_space<vmem>>, vector<1x64xf32>
      tpu.vector_store %arg7[%c0_14, %c0_15], %26 {strides = array<i32>} : memref<1x64xf32, #tpu.memory_space<vmem>>, vector<1x64xf32>,
    } else {
    }
    %c1_i32 = arith.constant 1 : i32
    %9 = arith.cmpi eq, %arg0, %c1_i32 : i32
    %c0_i32_6 = arith.constant 0 : i32
    %10 = arith.cmpi eq, %arg1, %c0_i32_6 : i32
    %11 = arith.andi %9, %10 : i1
    %12 = arith.extui %11 : i1 to i32
    %c0_i32_7 = arith.constant 0 : i32
    %13 = arith.cmpi ne, %12, %c0_i32_7 : i32
    scf.if %13 {
      %c0_12 = arith.constant 0 : index
      %c0_13 = arith.constant 0 : index
      %22 = vector.load %arg7[%c0_12, %c0_13] : memref<1x64xf32, #tpu.memory_space<vmem>>, vector<1x64xf32>
      %cst = arith.constant 0.00166666671 : f32
      %23 = vector.broadcast %cst : f32 to vector<1x64xf32>
      %24 = arith.mulf %22, %23 : vector<1x64xf32>
      %c0_14 = arith.constant 0 : index
      %c0_15 = arith.constant 0 : index
      %25 = vector.load %arg3[%c0_14, %c0_15] : memref<64x32xf32, #tpu.memory_space<vmem>>, vector<64x32xf32>
      %cst_16 = arith.constant dense<0.000000e+00> : vector<1x32xf32>
      %26 = tpu.matmul %24, %25, %cst_16 {dimension_numbers = #tpu.dot_dimension_numbers<[1], [0], [0], [1], [0, 0, 1, 1], [], []>} : vector<1x64xf32>, vector<64x32xf32>, vector<1x32xf32> -> vector<1x32xf32>
      %27 = arith.negf %26 : vector<1x32xf32>
      %28 = math.exp %27 : vector<1x32xf32>
      %cst_17 = arith.constant 1.000000e+00 : f32
      %29 = vector.broadcast %cst_17 : f32 to vector<1x32xf32>
      %30 = arith.addf %29, %28 : vector<1x32xf32>
      %31 = arith.divf %29, %30 : vector<1x32xf32>
      %c0_18 = arith.constant 0 : index
      %c0_19 = arith.constant 0 : index
      %32 = vector.load %arg5[%c0_18, %c0_19] : memref<32x32xf32, #tpu.memory_space<vmem>>, vector<32x32xf32>
      %cst_20 = arith.constant dense<0.000000e+00> : vector<1x32xf32>
      %33 = tpu.matmul %31, %32, %cst_20 {dimension_numbers = #tpu.dot_dimension_numbers<[1], [0], [0], [1], [0, 0, 1, 1], [], []>} : vector<1x32xf32>, vector<32x32xf32>, vector<1x32xf32> -> vector<1x32xf32>
      %c0_21 = arith.constant 0 : index
      %c0_22 = arith.constant 0 : index
      %34 = vector.load %arg4[%c0_21, %c0_22] : memref<32x64xf32, #tpu.memory_space<vmem>>, vector<32x64xf32>
      %cst_23 = arith.constant dense<0.000000e+00> : vector<1x64xf32>
      %35 = tpu.matmul %33, %34, %cst_23 {dimension_numbers = #tpu.dot_dimension_numbers<[1], [0], [0], [1], [0, 0, 1, 1], [], []>} : vector<1x32xf32>, vector<32x64xf32>, vector<1x64xf32> -> vector<1x64xf32>
      %c0_24 = arith.constant 0 : index
      %c0_25 = arith.constant 0 : index
      %36 = vector.load %arg8[%c0_24, %c0_25] : memref<1x64xf32, #tpu.memory_space<vmem>>, vector<1x64xf32>
      tpu.vector_store %arg8[%c0_24, %c0_25], %35 {strides = array<i32>} : memref<1x64xf32, #tpu.memory_space<vmem>>, vector<1x64xf32>,
    } else {
    }
    %c1_i32_8 = arith.constant 1 : i32
    %14 = arith.cmpi eq, %arg0, %c1_i32_8 : i32
    %15 = arith.extui %14 : i1 to i32
    %c0_i32_9 = arith.constant 0 : i32
    %16 = arith.cmpi ne, %15, %c0_i32_9 : i32
    scf.if %16 {
      %c0_12 = arith.constant 0 : index
      %c0_13 = arith.constant 0 : index
      %22 = vector.load %arg8[%c0_12, %c0_13] : memref<1x64xf32, #tpu.memory_space<vmem>>, vector<1x64xf32>
      %23 = vector.shape_cast %22 : vector<1x64xf32> to vector<1x1x64xf32>
      %24 = vector.broadcast %23 : vector<1x1x64xf32> to vector<2x128x64xf32>
      %25 = arith.mulf %0, %24 : vector<2x128x64xf32>
      %cst = arith.constant dense<0.000000e+00> : vector<2x128xf32>
      %26 = vector.multi_reduction <add>, %25, %cst [2] : vector<2x128x64xf32> to vector<2x128xf32>
      %27 = math.absf %26 : vector<2x128xf32>
      %cst_14 = arith.constant 0.000000e+00 : f32
      %28 = vector.broadcast %cst_14 : f32 to vector<2x128xf32>
      %29 = arith.subf %28, %27 : vector<2x128xf32>
      %30 = math.exp %29 : vector<2x128xf32>
      %cst_15 = arith.constant 1.000000e+00 : f32
      %31 = vector.broadcast %cst_15 : f32 to vector<2x128xf32>
      %32 = arith.addf %31, %30 : vector<2x128xf32>
      %33 = math.log %32 : vector<2x128xf32>
      %cst_16 = arith.constant 2.000000e+00 : f32
      %34 = vector.broadcast %cst_16 : f32 to vector<2x128xf32>
      %35 = arith.mulf %34, %33 : vector<2x128xf32>
      %36 = arith.addf %27, %35 : vector<2x128xf32>
      %37 = tpu.iota {dimensions = array<i32: 0>} : vector<2x128xi32>
      %38 = tpu.iota {dimensions = array<i32: 1>} : vector<2x128xi32>
      %c256_i32 = arith.constant 256 : i32
      %39 = arith.muli %arg1, %c256_i32 : i32
      %c128_i32 = arith.constant 128 : i32
      %40 = vector.broadcast %c128_i32 : i32 to vector<2x128xi32>
      %41 = arith.muli %37, %40 : vector<2x128xi32>
      %42 = vector.broadcast %39 : i32 to vector<2x128xi32>
      %43 = arith.addi %42, %41 : vector<2x128xi32>
      %44 = arith.addi %43, %38 : vector<2x128xi32>
      %c600_i32 = arith.constant 600 : i32
      %45 = vector.broadcast %c600_i32 : i32 to vector<2x128xi32>
      %46 = arith.cmpi slt, %44, %45 : vector<2x128xi32>
      %cst_17 = arith.constant 0.000000e+00 : f32
      %47 = vector.broadcast %cst_17 : f32 to vector<2x128xf32>
      %48 = arith.select %46, %36, %47 : vector<2x128xi1>, vector<2x128xf32>
      %cst_18 = arith.constant dense<0.000000e+00> : vector<2xf32>
      %49 = vector.multi_reduction <add>, %48, %cst_18 [1] : vector<2x128xf32> to vector<2xf32>
      %50 = vector.shape_cast %49 : vector<2xf32> to vector<2x1xf32>
      %c0_19 = arith.constant 0 : index
      %c0_20 = arith.constant 0 : index
      %51 = vector.load %arg9[%c0_19, %c0_20] : memref<1x1xf32, #tpu.memory_space<vmem>>, vector<1x1xf32>
      %cst_21 = arith.constant dense<0.000000e+00> : vector<1xf32>
      %52 = vector.multi_reduction <add>, %50, %cst_21 [0] : vector<2x1xf32> to vector<1xf32>
      %53 = vector.shape_cast %52 : vector<1xf32> to vector<1x1xf32>
      %54 = arith.addf %51, %53 : vector<1x1xf32>
      %c0_22 = arith.constant 0 : index
      %c0_23 = arith.constant 0 : index
      %55 = vector.load %arg9[%c0_22, %c0_23] : memref<1x1xf32, #tpu.memory_space<vmem>>, vector<1x1xf32>
      tpu.vector_store %arg9[%c0_22, %c0_23], %54 {strides = array<i32>} : memref<1x1xf32, #tpu.memory_space<vmem>>, vector<1x1xf32>,
    } else {
    }
    %c1_i32_10 = arith.constant 1 : i32
    %17 = arith.cmpi eq, %arg0, %c1_i32_10 : i32
    %c2_i32 = arith.constant 2 : i32
    %18 = arith.cmpi eq, %arg1, %c2_i32 : i32
    %19 = arith.andi %17, %18 : i1
    %20 = arith.extui %19 : i1 to i32
    %c0_i32_11 = arith.constant 0 : i32
    %21 = arith.cmpi ne, %20, %c0_i32_11 : i32
    scf.if %21 {
      %c0_12 = arith.constant 0 : index
      %c0_13 = arith.constant 0 : index
      %22 = vector.load %arg9[%c0_12, %c0_13] : memref<1x1xf32, #tpu.memory_space<vmem>>, vector<1x1xf32>
      %23 = vector.shape_cast %22 : vector<1x1xf32> to vector<1x1x1xf32>
      %cst = arith.constant dense<0.000000e+00> : vector<1xf32>
      %24 = vector.multi_reduction <add>, %23, %cst [1, 2] : vector<1x1x1xf32> to vector<1xf32>
      %25 = vector.shape_cast %24 : vector<1xf32> to vector<1x1x1xf32>
      %26 = vector.extract %25[0, 0, 0] : f32 from vector<1x1x1xf32>
      %cst_14 = arith.constant 0.00166666671 : f32
      %27 = arith.mulf %26, %cst_14 : f32
      %c0_15 = arith.constant 0 : index
      %c0_16 = arith.constant 0 : index
      %28 = memref.load %arg6[%c0_15, %c0_16] : memref<1x1xf32, #tpu.memory_space<smem>>
      memref.store %27, %arg6[%c0_15, %c0_16] : memref<1x1xf32, #tpu.memory_space<smem>>
    } else {
    }
    return
  }
  func.func @transform_0(%arg0: i32, %arg1: i32) -> (i32, i32, i32) {
    %c0_i32 = arith.constant 0 : i32
    %c0_i32_0 = arith.constant 0 : i32
    %c0_i32_1 = arith.constant 0 : i32
    return %arg1, %c0_i32, %c0_i32_0 : i32, i32, i32
  }
  func.func @transform_1(%arg0: i32, %arg1: i32) -> (i32, i32) {
    %c0_i32 = arith.constant 0 : i32
    %c0_i32_0 = arith.constant 0 : i32
    %c0_i32_1 = arith.constant 0 : i32
    return %c0_i32, %c0_i32_0 : i32, i32
  }
  func.func @transform_2(%arg0: i32, %arg1: i32) -> (i32, i32) {
    %c0_i32 = arith.constant 0 : i32
    %c0_i32_0 = arith.constant 0 : i32
    %c0_i32_1 = arith.constant 0 : i32
    return %c0_i32, %c0_i32_0 : i32, i32
  }
  func.func @transform_3(%arg0: i32, %arg1: i32) -> (i32, i32) {
    %c0_i32 = arith.constant 0 : i32
    %c0_i32_0 = arith.constant 0 : i32
    %c0_i32_1 = arith.constant 0 : i32
    return %c0_i32, %c0_i32_0 : i32, i32
  }
  func.func @transform_4(%arg0: i32, %arg1: i32) -> (i32, i32) {
    %c0_i32 = arith.constant 0 : i32
    %c0_i32_0 = arith.constant 0 : i32
    %c0_i32_1 = arith.constant 0 : i32
    return %c0_i32, %c0_i32_0 : i32, i32
  }
}

</mosaic_0001>

<bundles_post_ra>
// kernel: tpu_custom_call.1
= control target key start
LH: loop header
LB: loop body
LE: loop exit
PB: predicated region body
PF: predicated region fallthrough
CT: control target
= control target key end

     0   :  { %9 = vsyncpa [#allocation6], 0  ;;  %s1691_s15 = smov 0   ;;  %s1693_s16 = smov 0   ;;  %s2472_s0 = inlined_call_operand.vmem [shape: f32[6,128,64], index: 0, kind: input, shape index: {}]   ;;  %s2473_s1 = inlined_call_operand.vmem [shape: f32[64,32], index: 1, kind: input, shape index: {}]   ;;  %s2474_s2 = inlined_call_operand.vmem [shape: f32[32,64], index: 2, kind: input, shape index: {}]   ;;  %s2475_s3 = inlined_call_operand.vmem [shape: f32[32,32], index: 3, kind: input, shape index: {}]   ;;  %s2476_s4 = inlined_call_operand.hbm [shape: f32[1,1], index: 4, kind: output, shape index: {}]  }
   0x1   :  { %s1695_s17 = smov 0   ;;  %s1697_s18 = smov 0  }
   0x2   :  { %s1699_s19 = smov 0  }
   0x3 LB: > { %s1316_s20 = sadd.s32 4294967295, %s1659_s19   ;;  %s24_s21 = sadd.s32 1, %s1651_s17  ;;  %s1659_s19 = sphi %s1699_s19, %s15_s19   ;;  %s1655_s18 = sphi %s1697_s18, %s2578_s18   ;;  %s1651_s17 = sphi %s1695_s17, %s2577_s17   ;;  %s1647_s16 = sphi %s1693_s16, %s2576_s16   ;;  %s1643_s15 = sphi %s1691_s15, %s2575_s15  }
   0x4   : > { %p25_p0 = scmp.ge.s32.totalorder %s24_s21, 3  ;;  %s27_s22 = sadd.s32 1, %s1655_s18 }
   0x5   : > { %p1319_p1 = scmp.ge.s32.totalorder %s1659_s19, 1  ;;  %p172_p2 = scmp.lt.s32.totalorder %s1659_s19, 7 }
   0x6   : > { %s2580_s21 = smov (%p25_p0, %s24_s21), 0  ;;  %s2582_s22 = smov (!%p25_p0, %s27_s22), %s1655_s18 }
   0x7   : > { %p173_p3 = pnand %p1319_p1, %p172_p2  ;;  %p29_p4 = scmp.ge.s32.totalorder %s2582_s22, 2 }
   0x8   : > { %s1320_s23 = sshll.u32 (!%p173_p3), %s1643_s15, 1  ;;  %p233_p5 = scmp.eq.s32.totalorder (!%p173_p3), %s1647_s16, 0 }
   0x9   : > { %s2584_s22 = smov (%p29_p4, %s2582_s22), 0  ;;  %176 = sbr.rel (%p173_p3) target bundleno = 1301 (0x515), region = 36 }
   0xa   : > { %p195_p6 = scmp.lt.s32.totalorder (!%p173_p3), %s1320_s23, 5  ;;  %p234_p7 = scmp.eq.s32.totalorder (!%p173_p3), %s1643_s15, 0 }
   0xc   : > { %p1731_p8 = pnand (!%p173_p3), %p234_p7, %p233_p5 }
  0x10   : > { %s2586_s23 = smov (!%p195_p6, %s1320_s23), 5  ;;  %vm239_vm0 = vcmask (!%p1731_p8), 516096   ;;  %vm241_vm1 = vcmask (!%p1731_p8), 0   ;;  %v1661_v32 = vmov (!%p1731_p8), 0.0  }
  0x11   : > { %s1335_s25 = sshll.u32 %s2586_s23, 7  ;;  %240 = vst.msk [vmem:[#allocation2] sm:$0x1] (!%p1731_p8), %vm239_vm0, %v1661_v32 }
  0x12   : > { %s1738_s28 = scalar_lea.vmem %s2472_s0, %s1335_s25  ;;  %242 = vst.msk [vmem:[#allocation4] sm:$0x1] (!%p1731_p8), %vm241_vm1, %v1661_v32 }
  0x13   : > { %v1741_v0 = vld [vmem:[%s1738_s28] sm:$0xff]  ;;  %v1744_v1 = vld [vmem:[%s1738_s28 + $0x8] sm:$0xff]  ;;  %v1747_v2 = vld [vmem:[%s1738_s28 + $0x10] sm:$0xff] }
  0x14   : > { %v1750_v3 = vld [vmem:[%s1738_s28 + $0x18] sm:$0xff]  ;;  %v1753_v4 = vld [vmem:[%s1738_s28 + $0x20] sm:$0xff]  ;;  %v1756_v5 = vld [vmem:[%s1738_s28 + $0x28] sm:$0xff] }
  0x15   : > { %v1759_v6 = vld [vmem:[%s1738_s28 + $0x30] sm:$0xff]  ;;  %v1762_v7 = vld [vmem:[%s1738_s28 + $0x38] sm:$0xff]  ;;  %v1765_v8 = vld [vmem:[%s1738_s28 + $0x40] sm:$0xff] }
  0x16   : > { %v1768_v9 = vld [vmem:[%s1738_s28 + $0x48] sm:$0xff]  ;;  %v1771_v10 = vld [vmem:[%s1738_s28 + $0x50] sm:$0xff]  ;;  %v1774_v11 = vld [vmem:[%s1738_s28 + $0x58] sm:$0xff] }
  0x17   : > { %v1777_v12 = vld [vmem:[%s1738_s28 + $0x60] sm:$0xff]  ;;  %v1780_v13 = vld [vmem:[%s1738_s28 + $0x68] sm:$0xff]  ;;  %v1783_v14 = vld [vmem:[%s1738_s28 + $0x70] sm:$0xff]  ;;  %238 = sbr.rel (%p1731_p8) target bundleno = 30 (0x1e), region = 40 }
  0x18   : > { %v1786_v15 = vld [vmem:[%s1738_s28 + $0x78] sm:$0xff]  ;;  %v1789_v16 = vld [vmem:[%s1738_s28 + $0x80] sm:$0xff]  ;;  %v1792_v17 = vld [vmem:[%s1738_s28 + $0x88] sm:$0xff] }
  0x19   : > { %v1795_v18 = vld [vmem:[%s1738_s28 + $0x90] sm:$0xff]  ;;  %v1798_v19 = vld [vmem:[%s1738_s28 + $0x98] sm:$0xff]  ;;  %v1801_v20 = vld [vmem:[%s1738_s28 + $0xa0] sm:$0xff] }
  0x1a   : > { %v1804_v21 = vld [vmem:[%s1738_s28 + $0xa8] sm:$0xff]  ;;  %v1807_v22 = vld [vmem:[%s1738_s28 + $0xb0] sm:$0xff]  ;;  %v1810_v23 = vld [vmem:[%s1738_s28 + $0xb8] sm:$0xff] }
  0x1b   : > { %v1813_v24 = vld [vmem:[%s1738_s28 + $0xc0] sm:$0xff]  ;;  %v1816_v25 = vld [vmem:[%s1738_s28 + $0xc8] sm:$0xff]  ;;  %v1819_v26 = vld [vmem:[%s1738_s28 + $0xd0] sm:$0xff] }
  0x1c   : > { %v1822_v27 = vld [vmem:[%s1738_s28 + $0xd8] sm:$0xff]  ;;  %v1825_v28 = vld [vmem:[%s1738_s28 + $0xe0] sm:$0xff]  ;;  %v1828_v29 = vld [vmem:[%s1738_s28 + $0xe8] sm:$0xff] }
  0x1d   : > { %v1831_v30 = vld [vmem:[%s1738_s28 + $0xf0] sm:$0xff]  ;;  %v1834_v31 = vld [vmem:[%s1738_s28 + $0xf8] sm:$0xff] }
  0x1e PF: > { %p1323_p9 = scmp.ne.s32.totalorder %s1647_s16, 0 }
  0x1f   : > { %vm247_vm2 = vcmask (!%p1323_p9), 523264   ;;  %vm318_vm3 = vcmask (!%p1323_p9), 516096  }
  0x20   : > { %245 = sbr.rel (%p1323_p9) target bundleno = 110 (0x6e), region = 44  ;;  %v248_v33 = vsel (!%p1323_p9), %vm247_vm2, %v1741_v0, 0.0  ;;  %v249_v34 = vsel (!%p1323_p9), %vm247_vm2, %v1744_v1, 0.0  ;;  %v251_v35 = vsel (!%p1323_p9), %vm247_vm2, %v1747_v2, 0.0  ;;  %v253_v37 = vsel (!%p1323_p9), %vm247_vm2, %v1750_v3, 0.0 }
  0x21   : > { %v250_v36 = vadd.f32 (!%p1323_p9), %v249_v34, %v248_v33  ;;  %v255_v39 = vsel (!%p1323_p9), %vm247_vm2, %v1753_v4, 0.0  ;;  %v257_v41 = vsel (!%p1323_p9), %vm247_vm2, %v1756_v5, 0.0  ;;  %v259_v43 = vsel (!%p1323_p9), %vm247_vm2, %v1759_v6, 0.0 }
  0x22   : > { %v261_v45 = vsel (!%p1323_p9), %vm247_vm2, %v1762_v7, 0.0  ;;  %v263_v47 = vsel (!%p1323_p9), %vm247_vm2, %v1765_v8, 0.0  ;;  %v265_v49 = vsel (!%p1323_p9), %vm247_vm2, %v1768_v9, 0.0  ;;  %v267_v51 = vsel (!%p1323_p9), %vm247_vm2, %v1771_v10, 0.0 }
  0x23   : > { %v252_v38 = vadd.f32 (!%p1323_p9), %v251_v35, %v250_v36  ;;  %v269_v53 = vsel (!%p1323_p9), %vm247_vm2, %v1774_v11, 0.0  ;;  %v271_v55 = vsel (!%p1323_p9), %vm247_vm2, %v1777_v12, 0.0  ;;  %v273_v57 = vsel (!%p1323_p9), %vm247_vm2, %v1780_v13, 0.0 }
  0x24   : > { %v275_v59 = vsel (!%p1323_p9), %vm247_vm2, %v1783_v14, 0.0  ;;  %v277_v61 = vsel (!%p1323_p9), %vm247_vm2, %v1786_v15, 0.0  ;;  %v279_v63 = vsel (!%p1323_p9), %vm247_vm2, %v1789_v16, 0.0  ;;  %v281_v33 = vsel (!%p1323_p9), %vm247_vm2, %v1792_v17, 0.0 }
  0x25   : > { %v254_v40 = vadd.f32 (!%p1323_p9), %v253_v37, %v252_v38  ;;  %v283_v35 = vsel (!%p1323_p9), %vm247_vm2, %v1795_v18, 0.0  ;;  %v285_v37 = vsel (!%p1323_p9), %vm247_vm2, %v1798_v19, 0.0 }
  0x27   : > { %v256_v42 = vadd.f32 %v255_v39, %v254_v40  ;;  %v287_v39 = vsel %vm247_vm2, %v1801_v20, 0.0 }
  0x29   : > { %v258_v44 = vadd.f32 %v257_v41, %v256_v42  ;;  %v289_v41 = vsel %vm247_vm2, %v1804_v21, 0.0 }
  0x2b   : > { %v260_v46 = vadd.f32 %v259_v43, %v258_v44  ;;  %v291_v43 = vsel %vm247_vm2, %v1807_v22, 0.0 }
  0x2d   : > { %v262_v48 = vadd.f32 %v261_v45, %v260_v46  ;;  %v293_v45 = vsel %vm247_vm2, %v1810_v23, 0.0 }
  0x2f   : > { %v264_v50 = vadd.f32 %v263_v47, %v262_v48  ;;  %v295_v47 = vsel %vm247_vm2, %v1813_v24, 0.0 }
  0x31   : > { %v266_v52 = vadd.f32 %v265_v49, %v264_v50  ;;  %v297_v49 = vsel %vm247_vm2, %v1816_v25, 0.0 }
  0x33   : > { %v268_v54 = vadd.f32 %v267_v51, %v266_v52  ;;  %v299_v51 = vsel %vm247_vm2, %v1819_v26, 0.0 }
  0x35   : > { %v270_v56 = vadd.f32 %v269_v53, %v268_v54  ;;  %v301_v53 = vsel %vm247_vm2, %v1822_v27, 0.0 }
  0x37   : > { %v272_v58 = vadd.f32 %v271_v55, %v270_v56  ;;  %v303_v55 = vsel %vm247_vm2, %v1825_v28, 0.0 }
  0x39   : > { %v274_v60 = vadd.f32 %v273_v57, %v272_v58  ;;  %v305_v57 = vsel %vm247_vm2, %v1828_v29, 0.0 }
  0x3b   : > { %v276_v62 = vadd.f32 %v275_v59, %v274_v60  ;;  %v307_v59 = vsel %vm247_vm2, %v1831_v30, 0.0 }
  0x3d   : > { %v278_v32 = vadd.f32 %v277_v61, %v276_v62  ;;  %v309_v61 = vsel %vm247_vm2, %v1834_v31, 0.0 }
  0x3f   : > { %v280_v34 = vadd.f32 %v279_v63, %v278_v32 }
  0x41   : > { %v282_v36 = vadd.f32 %v281_v33, %v280_v34 }
  0x43   : > { %v284_v38 = vadd.f32 %v283_v35, %v282_v36 }
  0x45   : > { %v286_v40 = vadd.f32 %v285_v37, %v284_v38  ;;  %v246_v37 = vld [vmem:[#allocation2] sm:$0x1] }
  0x47   : > { %v288_v42 = vadd.f32 %v287_v39, %v286_v40 }
  0x49   : > { %v290_v44 = vadd.f32 %v289_v41, %v288_v42 }
  0x4b   : > { %v292_v46 = vadd.f32 %v291_v43, %v290_v44 }
  0x4d   : > { %v294_v48 = vadd.f32 %v293_v45, %v292_v46 }
  0x4f   : > { %v296_v50 = vadd.f32 %v295_v47, %v294_v48 }
  0x51   : > { %v298_v52 = vadd.f32 %v297_v49, %v296_v50 }
  0x53   : > { %v300_v54 = vadd.f32 %v299_v51, %v298_v52 }
  0x55   : > { %v302_v56 = vadd.f32 %v301_v53, %v300_v54 }
  0x57   : > { %v304_v58 = vadd.f32 %v303_v55, %v302_v56 }
  0x59   : > { %v306_v60 = vadd.f32 %v305_v57, %v304_v58 }
  0x5b   : > { %v308_v62 = vadd.f32 %v307_v59, %v306_v60 }
  0x5d   : > { %v310_v63 = vadd.f32 %v309_v61, %v308_v62 }
  0x5f   : > { %v311_v32 = vrot.slane %v310_v63, 4 }
  0x61   : > { %v312_v33 = vadd.f32 %v311_v32, %v310_v63 }
  0x63   : > { %v313_v34 = vrot.slane %v312_v33, 2 }
  0x65   : > { %v314_v35 = vadd.f32 %v313_v34, %v312_v33 }
  0x67   : > { %v315_v36 = vrot.slane %v314_v35, 1 }
  0x69   : > { %v316_v38 = vadd.f32 %v315_v36, %v314_v35 }
  0x6b   : > { %v317_v39 = vadd.f32 %v316_v38, %v246_v37 }
  0x6d   : > { %319 = vst.msk [vmem:[#allocation2] sm:$0x1] %vm318_vm3, %v317_v39 }
  0x6e PF: > { %p320_p10 = scmp.eq.s32.totalorder %s1647_s16, 1 }
  0x70   : > { %p321_p11 = pnand %p320_p10, %p234_p7 }
  0x71   : > { %v327_v40 = vld [vmem:[%s2473_s1] sm:$0xff] (!%p321_p11)  ;;  %v328_v41 = vld [vmem:[%s2473_s1 + $0x8] sm:$0xff] (!%p321_p11)  ;;  %v329_v42 = vld [vmem:[%s2473_s1 + $0x10] sm:$0xff] (!%p321_p11)  ;;  %v1662_v43 = vmov (!%p321_p11), 0.0|0.0   ;;  %vm1663_vm4 = vmmov (!%p321_p11), 0   ;;  %v1664_v46 = vmov (!%p321_p11), 0.0  }
  0x72   : > { %324 = sbr.rel (%p321_p11) target bundleno = 794 (0x31a), region = 48  ;;  %1396 = vmatprep.subr.bf16.mxu0 (!%p321_p11), %v1662_v43  ;;  %v1397_v44 = vpack.c.bf16 (!%p321_p11), %v328_v41, %v327_v40  ;;  %v330_v45 = vld [vmem:[%s2473_s1 + $0x18] sm:$0xff] (!%p321_p11)  ;;  %1371 = vmatprep.mubr.msk.f32.mxu0 (!%p321_p11), %vm1663_vm4, %v1664_v46  ;;  %v331_v48 = vld [vmem:[%s2473_s1 + $0x20] sm:$0xff] (!%p321_p11)  ;;  %v332_v49 = vld [vmem:[%s2473_s1 + $0x28] sm:$0xff] (!%p321_p11)  ;;  %vm335_vm5 = vcmask (!%p321_p11), 523264   ;;  %vm419_vm6 = vcmask (!%p321_p11), 261120  }
  0x73   : > { %1408 = vmatprep.subr.bf16.mxu1 (!%p321_p11), %v1662_v43  ;;  %1382 = vmatprep.mubr.msk.f32.mxu1 (!%p321_p11), %vm1663_vm4, %v1664_v46  ;;  %v1400_v47 = vpack.c.bf16 (!%p321_p11), %v330_v45, %v329_v42  ;;  %v1403_v50 = vpack.c.bf16 (!%p321_p11), %v332_v49, %v331_v48  ;;  %v333_v51 = vld [vmem:[%s2473_s1 + $0x30] sm:$0xff] (!%p321_p11)  ;;  %v334_v52 = vld [vmem:[%s2473_s1 + $0x38] sm:$0xff] (!%p321_p11)  ;;  %v415_v56 = vld [vmem:[%s2475_s3] sm:$0xff] (!%p321_p11)  ;;  %vm570_vm7 = vcmask (!%p321_p11), 516096  }
  0x74   : > { %1398 = vmatpush3.bf16.msra.mxu0 (!%p321_p11), %v1397_v44  ;;  %v1406_v53 = vpack.c.bf16 (!%p321_p11), %v334_v52, %v333_v51  ;;  %v325_v54 = vld [vmem:[#allocation2] sm:$0x1] (!%p321_p11)  ;;  %v416_v57 = vld [vmem:[%s2475_s3 + $0x8] sm:$0xff] (!%p321_p11)  ;;  %v417_v58 = vld [vmem:[%s2475_s3 + $0x10] sm:$0xff] (!%p321_p11) }
  0x75   : > { %1399 = vmatprep.subr.bf16.mxu0 (!%p321_p11), %v1662_v43  ;;  %v326_v55 = vmul.f32 (!%p321_p11), 0.0016666667, %v325_v54  ;;  %v1409_v59 = vpack.c.bf16 (!%p321_p11), %v416_v57, %v415_v56  ;;  %v418_v60 = vld [vmem:[%s2475_s3 + $0x18] sm:$0xff] (!%p321_p11)  ;;  %v493_v35 = vld [vmem:[%s2474_s2] sm:$0xff] (!%p321_p11)  ;;  %v494_v36 = vld [vmem:[%s2474_s2 + $0x8] sm:$0xff] (!%p321_p11) }
  0x76   : > { %v1412_v61 = vpack.c.bf16 (!%p321_p11), %v418_v60, %v417_v58  ;;  %v1415_v37 = vpack.c.bf16 (!%p321_p11), %v494_v36, %v493_v35  ;;  %v495_v38 = vld [vmem:[%s2474_s2 + $0x10] sm:$0xff] (!%p321_p11)  ;;  %v496_v39 = vld [vmem:[%s2474_s2 + $0x18] sm:$0xff] (!%p321_p11) }
  0x77   : > { %1410 = vmatpush3.bf16.msra.mxu1 (!%p321_p11), %v1409_v59  ;;  %v1418_v41 = vpack.c.bf16 (!%p321_p11), %v496_v39, %v495_v38 }
  0x78   : > { %1401 = vmatpush3.bf16.msra.mxu0 (!%p321_p11), %v1400_v47  ;;  %1411 = vmatprep.subr.bf16.mxu1 (!%p321_p11), %v1662_v43 }
  0x79   : > { %1402 = vmatprep.subr.bf16.mxu0 %v1662_v43 }
  0x7b   : > { %1413 = vmatpush3.bf16.msra.mxu1 %v1412_v61 }
  0x7c   : > { %1404 = vmatpush3.bf16.msra.mxu0 %v1403_v50  ;;  %1414 = vmatprep.subr.bf16.mxu1 %v1662_v43 }
  0x7d   : > { %1405 = vmatprep.subr.bf16.mxu0 %v1662_v43 }
  0x80   : > { %1407 = vmatpush3.bf16.msra.mxu0 %v1406_v53 }
  0x83   : > { %1372 = vmatmul.mubr.msk.f32.vlgmr.msra.gmra.mrb[0].mxu0 %vm335_vm5, %v326_v55 }
 0x156   : > { %v405_v62 = vpop.f32.mrb[0].mxu0 }
 0x157   : > { %v1325_v63 = vmul.f32 -1.442695, %v405_v62  ;;  %v1373_v32 = vpop.f32.mrb[1].mxu0 }
 0x159   : > { %1473 = vpow2.f32 %v1325_v63 }
 0x163   : > { %v1474_v33 = vpop.eup %1473 }
 0x164   : > { %v412_v34 = vadd.f32 1.0, %v1474_v33 }
 0x166   : > { %1475 = vrcp.f32 %v412_v34 }
 0x170   : > { %v1476_v40 = vpop.eup %1475 }
 0x171   : > { %1383 = vmatmul.mubr.msk.f32.vlgmr.msra.gmra.mrb[0].mxu1 %vm419_vm6, %v1476_v40 }
 0x172   : > { %1416 = vmatpush3.bf16.msra.mxu1 %v1415_v37  ;;  %1393 = vmatprep.mubr.msk.f32.mxu1 %vm1663_vm4, %v1664_v46 }
 0x173   : > { %1417 = vmatprep.subr.bf16.mxu1 %v1662_v43 }
 0x176   : > { %1419 = vmatpush3.bf16.msra.mxu1 %v1418_v41 }
 0x244   : > { %v489_v42 = vpop.f32.mrb[0].mxu1 }
 0x245   : > { %v1384_v44 = vpop.f32.mrb[1].mxu1  ;;  %1394 = vmatmul.mubr.msk.f32.vlgmr.msra.gmra.mrb[2].mxu1 %vm419_vm6, %v489_v42 }
 0x318   : > { %v566_v45 = vpop.f32.mrb[2].mxu1 }
 0x319   : > { %571 = vst.msk [vmem:[#allocation3] sm:$0x1] %vm570_vm7, %v566_v45  ;;  %v1395_v47 = vpop.f32.mrb[3].mxu1 }
 0x31a PF: > { %p1328_p12 = scmp.ne.s32.totalorder %s1647_s16, 1 }
 0x31c   : > { %574 = sbr.rel (%p1328_p12) target bundleno = 1226 (0x4ca), region = 52 }
 0x323   : > { %v1960_v48 = vld [vmem:[#allocation3] ss:$0 sm:$0xff]  ;;  %vm614_vm8 = vcmask 523264   ;;  %s1330_s25 = sshll.u32 %s1643_s15, 8  ;;  %vm1050_vm9 = vcmask 130112   ;;  %vm1057_vm10 = vcmask 195712  }
 0x324   : > { %v598_v49 = vmul.f32 %v1960_v48, %v1789_v16  ;;  %v582_v43 = vmul.f32 %v1960_v48, %v1741_v0  ;;  %v599_v46 = vmul.f32 %v1960_v48, %v1792_v17  ;;  %v583_v50 = vmul.f32 %v1960_v48, %v1744_v1 }
 0x325   : > { %v600_v16 = vmul.f32 %v1960_v48, %v1795_v18  ;;  %v584_v0 = vmul.f32 %v1960_v48, %v1747_v2  ;;  %v601_v55 = vmul.f32 %v1960_v48, %v1798_v19  ;;  %v585_v56 = vmul.f32 %v1960_v48, %v1750_v3 }
 0x326   : > { %v663_v51 = vsel %vm614_vm8, %v598_v49, 0.0  ;;  %v615_v52 = vsel %vm614_vm8, %v582_v43, 0.0  ;;  %v666_v53 = vsel %vm614_vm8, %v599_v46, 0.0  ;;  %v618_v54 = vsel %vm614_vm8, %v583_v50, 0.0 }
 0x327   : > { %664 = vadd.xlane.f32.xlu1 %v663_v51  ;;  %616 = vadd.xlane.f32.xlu0 %v615_v52  ;;  %v669_v1 = vsel %vm614_vm8, %v600_v16, 0.0  ;;  %v621_v17 = vsel %vm614_vm8, %v584_v0, 0.0  ;;  %v672_v57 = vsel %vm614_vm8, %v601_v55, 0.0  ;;  %v624_v18 = vsel %vm614_vm8, %v585_v56, 0.0 }
 0x328   : > { %v602_v2 = vmul.f32 %v1960_v48, %v1801_v20  ;;  %v586_v58 = vmul.f32 %v1960_v48, %v1753_v4  ;;  %v603_v3 = vmul.f32 %v1960_v48, %v1804_v21  ;;  %v587_v60 = vmul.f32 %v1960_v48, %v1756_v5 }
 0x329   : > { %v604_v4 = vmul.f32 %v1960_v48, %v1807_v22  ;;  %v588_v62 = vmul.f32 %v1960_v48, %v1759_v6  ;;  %v605_v5 = vmul.f32 %v1960_v48, %v1810_v23  ;;  %v589_v32 = vmul.f32 %v1960_v48, %v1762_v7 }
 0x32a   : > { %v675_v59 = vsel %vm614_vm8, %v602_v2, 0.0  ;;  %v627_v19 = vsel %vm614_vm8, %v586_v58, 0.0  ;;  %v678_v61 = vsel %vm614_vm8, %v603_v3, 0.0  ;;  %v630_v20 = vsel %vm614_vm8, %v587_v60, 0.0 }
 0x32b   : > { %667 = vadd.xlane.f32.xlu1 %v666_v53  ;;  %619 = vadd.xlane.f32.xlu0 %v618_v54  ;;  %v681_v63 = vsel %vm614_vm8, %v604_v4, 0.0  ;;  %v633_v21 = vsel %vm614_vm8, %v588_v62, 0.0  ;;  %v684_v33 = vsel %vm614_vm8, %v605_v5, 0.0  ;;  %v636_v22 = vsel %vm614_vm8, %v589_v32, 0.0 }
 0x32c   : > { %v606_v6 = vmul.f32 %v1960_v48, %v1813_v24  ;;  %v590_v34 = vmul.f32 %v1960_v48, %v1765_v8  ;;  %v607_v7 = vmul.f32 %v1960_v48, %v1816_v25  ;;  %v591_v36 = vmul.f32 %v1960_v48, %v1768_v9 }
 0x32d   : > { %v608_v8 = vmul.f32 %v1960_v48, %v1819_v26  ;;  %v592_v38 = vmul.f32 %v1960_v48, %v1771_v10  ;;  %v609_v9 = vmul.f32 %v1960_v48, %v1822_v27  ;;  %v593_v40 = vmul.f32 %v1960_v48, %v1774_v11 }
 0x32e   : > { %v687_v35 = vsel %vm614_vm8, %v606_v6, 0.0  ;;  %v639_v23 = vsel %vm614_vm8, %v590_v34, 0.0  ;;  %v690_v37 = vsel %vm614_vm8, %v607_v7, 0.0  ;;  %v642_v24 = vsel %vm614_vm8, %v591_v36, 0.0 }
 0x32f   : > { %670 = vadd.xlane.f32.xlu1 %v669_v1  ;;  %622 = vadd.xlane.f32.xlu0 %v621_v17  ;;  %v693_v39 = vsel %vm614_vm8, %v608_v8, 0.0  ;;  %v645_v25 = vsel %vm614_vm8, %v592_v38, 0.0  ;;  %v696_v41 = vsel %vm614_vm8, %v609_v9, 0.0  ;;  %v648_v26 = vsel %vm614_vm8, %v593_v40, 0.0 }
 0x330   : > { %v610_v10 = vmul.f32 %v1960_v48, %v1825_v28  ;;  %v594_v42 = vmul.f32 %v1960_v48, %v1777_v12  ;;  %v611_v11 = vmul.f32 %v1960_v48, %v1828_v29  ;;  %v595_v45 = vmul.f32 %v1960_v48, %v1780_v13 }
 0x331   : > { %v612_v12 = vmul.f32 %v1960_v48, %v1831_v30  ;;  %v596_v49 = vmul.f32 %v1960_v48, %v1783_v14  ;;  %v613_v13 = vmul.f32 %v1960_v48, %v1834_v31  ;;  %v597_v46 = vmul.f32 %v1960_v48, %v1786_v15 }
 0x332   : > { %v699_v44 = vsel %vm614_vm8, %v610_v10, 0.0  ;;  %v651_v27 = vsel %vm614_vm8, %v594_v42, 0.0  ;;  %v702_v47 = vsel %vm614_vm8, %v611_v11, 0.0  ;;  %v654_v28 = vsel %vm614_vm8, %v595_v45, 0.0 }
 0x333   : > { %673 = vadd.xlane.f32.xlu1 %v672_v57  ;;  %625 = vadd.xlane.f32.xlu0 %v624_v18  ;;  %v705_v43 = vsel %vm614_vm8, %v612_v12, 0.0  ;;  %v657_v29 = vsel %vm614_vm8, %v596_v49, 0.0  ;;  %v708_v50 = vsel %vm614_vm8, %v613_v13, 0.0  ;;  %v660_v30 = vsel %vm614_vm8, %v597_v46, 0.0 }
 0x334   : > { %vm1064_vm11 = vcmask 261312   ;;  %vm1071_vm12 = vcmask 326912   ;;  %vm1078_vm13 = vcmask 392512   ;;  %vm1085_vm14 = vcmask 458112  }
 0x335   : > { %vm1092_vm15 = vcmask 523712   ;;  %vm1099_vm0 = vcmask 589312   ;;  %vm1106_vm1 = vcmask 654912   ;;  %vm1113_vm2 = vcmask 720512  }
 0x336   : > { %vm1120_vm3 = vcmask 786112   ;;  %vm1127_vm4 = vcmask 851712   ;;  %vm1134_vm5 = vcmask 917312   ;;  %vm1141_vm6 = vcmask 982912  }
 0x337   : > { %676 = vadd.xlane.f32.xlu1 %v675_v59  ;;  %628 = vadd.xlane.f32.xlu0 %v627_v19  ;;  %vm1148_vm7 = vcmask 1048512   ;;  %vm1229_vm8 = vcmask 1041409  }
 0x33b   : > { %679 = vadd.xlane.f32.xlu1 %v678_v61  ;;  %631 = vadd.xlane.f32.xlu0 %v630_v20 }
 0x33f   : > { %682 = vadd.xlane.f32.xlu1 %v681_v63  ;;  %634 = vadd.xlane.f32.xlu0 %v633_v21  ;;  %v999_v21 = vlaneseq }
 0x343   : > { %685 = vadd.xlane.f32.xlu1 %v684_v33  ;;  %637 = vadd.xlane.f32.xlu0 %v636_v22 }
 0x347   : > { %688 = vadd.xlane.f32.xlu1 %v687_v35  ;;  %640 = vadd.xlane.f32.xlu0 %v639_v23  ;;  %v2104_v35 = vand.u32 127, %v999_v21 }
 0x349   : > { %v1045_v8 = vadd.s32 4294967288, %v2104_v35  ;;  %v1059_v40 = vadd.s32 4294967272, %v2104_v35  ;;  %v1066_v12 = vadd.s32 4294967264, %v2104_v35  ;;  %v1073_v13 = vadd.s32 4294967256, %v2104_v35 }
 0x34b   : > { %691 = vadd.xlane.f32.xlu1 %v690_v37  ;;  %643 = vadd.xlane.f32.xlu0 %v642_v24  ;;  %v2111_v24 = vshrl.u32 %v999_v21, 7 }
 0x34d   : > { %v2128_v45 = vsub.s32 %v2104_v35, %v2111_v24  ;;  %v2139_v46 = vsub.s32 %v1059_v40, %v2111_v24  ;;  %v2156_v21 = vsub.s32 %v1073_v13, %v2111_v24  ;;  %v1101_v13 = vadd.s32 4294967224, %v2104_v35 }
 0x34f   : > { %694 = vadd.xlane.f32.xlu1 %v693_v39  ;;  %646 = vadd.xlane.f32.xlu0 %v645_v25  ;;  %v1052_v39 = vadd.s32 4294967280, %v2104_v35 }
 0x353   : > { %697 = vadd.xlane.f32.xlu1 %v696_v41  ;;  %649 = vadd.xlane.f32.xlu0 %v648_v26 }
 0x357   : > { %700 = vadd.xlane.f32.xlu1 %v699_v44  ;;  %652 = vadd.xlane.f32.xlu0 %v651_v27 }
 0x35b   : > { %703 = vadd.xlane.f32.xlu1 %v702_v47  ;;  %655 = vadd.xlane.f32.xlu0 %v654_v28  ;;  %v2131_v28 = vsub.s32 %v1045_v8, %v2111_v24 }
 0x35f   : > { %706 = vadd.xlane.f32.xlu1 %v705_v43  ;;  %658 = vadd.xlane.f32.xlu0 %v657_v29  ;;  %v2135_v43 = vsub.s32 %v1052_v39, %v2111_v24 }
 0x363   : > { %709 = vadd.xlane.f32.xlu1 %v708_v50  ;;  %661 = vadd.xlane.f32.xlu0 %v660_v30 }
 0x3b4   : > { %v2058_v14 = vpop.xlane.xlu1 %664  ;;  %v2060_v51 = vpop.xlane.xlu0 %616 }
 0x3b5   : > { %v2495_v52 = vand.u32 2147483647, %v2058_v14  ;;  %v2494_v53 = vand.u32 2147483647, %v2060_v51 }
 0x3b7   : > { %v759_v15 = vsub.f32 0.0, %v2495_v52  ;;  %v743_v16 = vsub.f32 0.0, %v2494_v53 }
 0x3b8   : > { %v2064_v31 = vpop.xlane.xlu1 %667  ;;  %v2066_v54 = vpop.xlane.xlu0 %619 }
 0x3b9   : > { %v2492_v48 = vand.u32 2147483647, %v2064_v31  ;;  %v2491_v0 = vand.u32 2147483647, %v2066_v54  ;;  %v807_v55 = vmul.f32 1.442695, %v759_v15 }
 0x3ba   : > { %v775_v57 = vmul.f32 1.442695, %v743_v16 }
 0x3bb   : > { %v760_v56 = vsub.f32 0.0, %v2492_v48  ;;  %v744_v18 = vsub.f32 0.0, %v2491_v0  ;;  %1477 = vpow2.f32 %v807_v55 }
 0x3bc   : > { %v2074_v1 = vpop.xlane.xlu1 %670  ;;  %v2076_v17 = vpop.xlane.xlu0 %622  ;;  %1479 = vpow2.f32 %v775_v57 }
 0x3bd   : > { %v2490_v2 = vand.u32 2147483647, %v2074_v1  ;;  %v2489_v19 = vand.u32 2147483647, %v2076_v17  ;;  %v809_v3 = vmul.f32 1.442695, %v760_v56 }
 0x3be   : > { %v777_v60 = vmul.f32 1.442695, %v744_v18 }
 0x3bf   : > { %v761_v61 = vsub.f32 0.0, %v2490_v2  ;;  %v745_v62 = vsub.f32 0.0, %v2489_v19  ;;  %1481 = vpow2.f32 %v809_v3  ;;  %v1005_v19 = vstv %s1330_s25 }
 0x3c0   : > { %v2083_v58 = vpop.xlane.xlu1 %673  ;;  %v2085_v59 = vpop.xlane.xlu0 %625  ;;  %1483 = vpow2.f32 %v777_v60  ;;  %v2152_v60 = vsub.s32 %v1066_v12, %v2111_v24 }
 0x3c1   : > { %v2488_v63 = vand.u32 2147483647, %v2083_v58  ;;  %v811_v5 = vmul.f32 1.442695, %v761_v61  ;;  %v779_v22 = vmul.f32 1.442695, %v745_v62 }
 0x3c2   : > { %v2487_v34 = vand.u32 2147483647, %v2085_v59 }
 0x3c3   : > { %v762_v6 = vsub.f32 0.0, %v2488_v63  ;;  %1485 = vpow2.f32 %v811_v5  ;;  %v1080_v5 = vadd.s32 4294967248, %v2104_v35 }
 0x3c4   : > { %v2090_v20 = vpop.xlane.xlu1 %676  ;;  %v2092_v4 = vpop.xlane.xlu0 %628  ;;  %1487 = vpow2.f32 %v779_v22  ;;  %v746_v9 = vsub.f32 0.0, %v2487_v34 }
 0x3c5   : > { %v2486_v23 = vand.u32 2147483647, %v2090_v20  ;;  %v1478_v37 = vpop.eup %1477  ;;  %v813_v25 = vmul.f32 1.442695, %v762_v6  ;;  %v2484_v26 = vand.u32 2147483647, %v2092_v4 }
 0x3c6   : > { %v1480_v38 = vpop.eup %1479  ;;  %v855_v10 = vadd.f32 1.0, %v1478_v37  ;;  %v781_v29 = vmul.f32 1.442695, %v746_v9 }
 0x3c7   : > { %v763_v41 = vsub.f32 0.0, %v2486_v23  ;;  %v839_v47 = vadd.f32 1.0, %v1480_v38  ;;  %1489 = vpow2.f32 %v813_v25  ;;  %v747_v30 = vsub.f32 0.0, %v2484_v26 }
 0x3c8   : > { %v2097_v32 = vpop.xlane.xlu1 %679  ;;  %v2099_v33 = vpop.xlane.xlu0 %631  ;;  %1491 = vlog2.f32 %v855_v10  ;;  %v1087_v38 = vadd.s32 4294967240, %v2104_v35 }
 0x3c9   : > { %v2483_v42 = vand.u32 2147483647, %v2097_v32  ;;  %v1482_v11 = vpop.eup %1481  ;;  %v815_v50 = vmul.f32 1.442695, %v763_v41  ;;  %v2481_v15 = vand.u32 2147483647, %v2099_v33  ;;  %1493 = vlog2.f32 %v839_v47 }
 0x3ca   : > { %v1484_v49 = vpop.eup %1483  ;;  %v856_v16 = vadd.f32 1.0, %v1482_v11  ;;  %1495 = vpow2.f32 %v781_v29  ;;  %v783_v37 = vmul.f32 1.442695, %v747_v30  ;;  %v1094_v29 = vadd.s32 4294967232, %v2104_v35 }
 0x3cb   : > { %v764_v55 = vsub.f32 0.0, %v2483_v42  ;;  %v840_v3 = vadd.f32 1.0, %v1484_v49  ;;  %1497 = vpow2.f32 %v815_v50  ;;  %v748_v8 = vsub.f32 0.0, %v2481_v15 }
 0x3cc   : > { %v2107_v7 = vpop.xlane.xlu1 %682  ;;  %v2109_v36 = vpop.xlane.xlu0 %634  ;;  %1499 = vlog2.f32 %v856_v16  ;;  %v1108_v30 = vadd.s32 4294967216, %v2104_v35  ;;  %v1115_v16 = vadd.s32 4294967208, %v2104_v35 }
 0x3cd   : > { %v2479_v56 = vand.u32 2147483647, %v2107_v7  ;;  %v2478_v61 = vand.u32 2147483647, %v2109_v36  ;;  %v1486_v62 = vpop.eup %1485  ;;  %v817_v39 = vmul.f32 1.442695, %v764_v55  ;;  %1501 = vlog2.f32 %v840_v3 }
 0x3ce   : > { %v1488_v6 = vpop.eup %1487  ;;  %v857_v10 = vadd.f32 1.0, %v1486_v62  ;;  %1503 = vpow2.f32 %v783_v37  ;;  %v785_v50 = vmul.f32 1.442695, %v748_v8 }
 0x3cf   : > { %v765_v25 = vsub.f32 0.0, %v2479_v56  ;;  %v749_v11 = vsub.f32 0.0, %v2478_v61  ;;  %v841_v12 = vadd.f32 1.0, %v1488_v6  ;;  %1505 = vpow2.f32 %v817_v39 }
 0x3d0   : > { %v2122_v44 = vpop.xlane.xlu1 %685  ;;  %v2124_v27 = vpop.xlane.xlu0 %637  ;;  %1507 = vlog2.f32 %v857_v10  ;;  %v2188_v56 = vsub.s32 %v1087_v38, %v2111_v24 }
 0x3d1   : > { %v2477_v22 = vand.u32 2147483647, %v2122_v44  ;;  %v2480_v9 = vand.u32 2147483647, %v2124_v27  ;;  %v1490_v55 = vpop.eup %1489  ;;  %v819_v3 = vmul.f32 1.442695, %v765_v25  ;;  %1509 = vlog2.f32 %v841_v12 }
 0x3d2   : > { %v787_v61 = vmul.f32 1.442695, %v749_v11  ;;  %v1492_v8 = vpop.eup %1491  ;;  %v2191_v25 = vsub.s32 %v1094_v29, %v2111_v24  ;;  %v858_v10 = vadd.f32 1.0, %v1490_v55  ;;  %1511 = vpow2.f32 %v785_v50 }
 0x3d3   : > { %v766_v49 = vsub.f32 0.0, %v2477_v22  ;;  %v750_v62 = vsub.f32 0.0, %v2480_v9  ;;  %v2183_v22 = vsub.s32 %v1080_v5, %v2111_v24  ;;  %v1494_v5 = vpop.eup %1493  ;;  %v2198_v11 = vsub.s32 %v1101_v13, %v2111_v24 }
 0x3d4   : > { %v2147_v57 = vpop.xlane.xlu1 %688  ;;  %v2149_v18 = vpop.xlane.xlu0 %640  ;;  %v2201_v12 = vsub.s32 %v1108_v30, %v2111_v24  ;;  %1513 = vpow2.f32 %v819_v3  ;;  %v1122_v13 = vadd.s32 4294967200, %v2104_v35  ;;  %v1129_v3 = vadd.s32 4294967192, %v2104_v35 }
 0x3d5   : > { %v2482_v47 = vand.u32 2147483647, %v2147_v57  ;;  %v2485_v6 = vand.u32 2147483647, %v2149_v18  ;;  %v821_v39 = vmul.f32 1.442695, %v766_v49  ;;  %v1496_v38 = vpop.eup %1495  ;;  %1515 = vpow2.f32 %v787_v61 }
 0x3d6   : > { %2520 = vst [vmem:[#allocation8_spill] sm:$0xff] %v2198_v11  ;;  %2521 = vst [vmem:[#allocation9_spill] sm:$0xff] %v2201_v12  ;;  %v789_v49 = vmul.f32 1.442695, %v750_v62  ;;  %v1498_v42 = vpop.eup %1497  ;;  %v1136_v62 = vadd.s32 4294967184, %v2104_v35  ;;  %v842_v0 = vadd.f32 1.0, %v1496_v38  ;;  %v2222_v48 = vsub.s32 %v1122_v13, %v2111_v24 }
 0x3d7   : > { %v767_v37 = vsub.f32 0.0, %v2482_v47  ;;  %v751_v29 = vsub.f32 0.0, %v2485_v6  ;;  %v2206_v47 = vsub.s32 %v1115_v16, %v2111_v24  ;;  %v1500_v55 = vpop.eup %1499  ;;  %1517 = vpow2.f32 %v821_v39 }
 0x3d8   : > { %v2166_v40 = vpop.xlane.xlu1 %691  ;;  %v2168_v41 = vpop.xlane.xlu0 %643  ;;  %v904_v23 = vmul.f32 0.6931472, %v1492_v8  ;;  %1519 = vlog2.f32 %v858_v10  ;;  %v1004_v16 = vmul.u32 128, %v2111_v24  ;;  %2523 = vst [vmem:[#allocation11_spill] sm:$0xff] %v2222_v48  ;;  %v1143_v8 = vadd.s32 4294967176, %v2104_v35 }
 0x3d9   : > { %2522 = vst [vmem:[#allocation10_spill] sm:$0xff] %v2206_v47  ;;  %v823_v26 = vmul.f32 1.442695, %v767_v37  ;;  %v2493_v50 = vand.u32 2147483647, %v2166_v40  ;;  %v1502_v6 = vpop.eup %1501  ;;  %1521 = vpow2.f32 %v789_v49  ;;  %v859_v52 = vadd.f32 1.0, %v1498_v42 }
 0x3da   : > { %v2500_v30 = vand.u32 2147483647, %v2168_v41  ;;  %v872_v37 = vmul.f32 0.6931472, %v1494_v5  ;;  %v791_v34 = vmul.f32 1.442695, %v751_v29  ;;  %v1504_v2 = vpop.eup %1503  ;;  %v2228_v12 = vsub.s32 %v1129_v3, %v2111_v24 }
 0x3db   : > { %v768_v61 = vsub.f32 0.0, %v2493_v50  ;;  %1523 = vpow2.f32 %v823_v26  ;;  %v1506_v10 = vpop.eup %1505  ;;  %v906_v50 = vmul.f32 0.6931472, %v1500_v55  ;;  %v874_v53 = vmul.f32 0.6931472, %v1502_v6 }
 0x3dc   : > { %v2193_v9 = vpop.xlane.xlu1 %694  ;;  %v2195_v15 = vpop.xlane.xlu0 %646  ;;  %v752_v5 = vsub.f32 0.0, %v2500_v30  ;;  %v951_v29 = vmul.f32 2.0, %v904_v23  ;;  %2524 = vst [vmem:[#allocation12_spill] sm:$0xff] %v2228_v12  ;;  %v1006_v38 = vadd.s32 %v1005_v19, %v1004_v16  ;;  %v935_v11 = vmul.f32 2.0, %v872_v37 }
 0x3dd   : > { %v1508_v49 = vpop.eup %1507  ;;  %v825_v47 = vmul.f32 1.442695, %v768_v61  ;;  %v843_v13 = vadd.f32 1.0, %v1504_v2  ;;  %1525 = vpow2.f32 %v791_v34  ;;  %v2231_v48 = vsub.s32 %v1136_v62, %v2111_v24 }
 0x3de   : > { %v1510_v26 = vpop.eup %1509  ;;  %1527 = vlog2.f32 %v842_v0  ;;  %v860_v42 = vadd.f32 1.0, %v1506_v10  ;;  %v2501_v6 = vand.u32 2147483647, %v2193_v9  ;;  %v2235_v30 = vsub.s32 %v1143_v8, %v2111_v24 }
 0x3df   : > { %2525 = vst [vmem:[#allocation13_spill] sm:$0xff] %v2231_v48  ;;  %v1512_v55 = vpop.eup %1511  ;;  %v952_v61 = vmul.f32 2.0, %v906_v50  ;;  %v936_v3 = vmul.f32 2.0, %v874_v53  ;;  %1529 = vlog2.f32 %v859_v52  ;;  %v793_v19 = vmul.f32 1.442695, %v752_v5 }
 0x3e0   : > { %v2217_v63 = vpop.xlane.xlu1 %697  ;;  %v2219_v39 = vpop.xlane.xlu0 %649  ;;  %2526 = vst [vmem:[#allocation14_spill] sm:$0xff] %v2235_v30  ;;  %v2527_v62 = vand.u32 2147483647, %v2058_v14  ;;  %1531 = vpow2.f32 %v825_v47  ;;  %v769_v0 = vsub.f32 0.0, %v2501_v6  ;;  %v2248_v24 = vadd.s32 %v1006_v38, %v2104_v35 }
 0x3e1   : > { %v1514_v23 = vpop.eup %1513  ;;  %v2529_v52 = vand.u32 2147483647, %v2060_v51  ;;  %1533 = vlog2.f32 %v843_v13  ;;  %v844_v8 = vadd.f32 1.0, %v1512_v55  ;;  %v2504_v10 = vand.u32 2147483647, %v2195_v15 }
 0x3e2   : > { %v1516_v34 = vpop.eup %1515  ;;  %v2243_v37 = vadd.f32 %v951_v29, %v2527_v62  ;;  %2528 = vst [vmem:[#allocation15_spill] sm:$0xff] %v2248_v24  ;;  %v908_v14 = vmul.f32 0.6931472, %v1508_v49  ;;  %1535 = vlog2.f32 %v860_v42  ;;  %v861_v29 = vadd.f32 1.0, %v1514_v23 }
 0x3e3   : > { %v1518_v50 = vpop.eup %1517  ;;  %v967_v53 = vadd.f32 %v935_v11, %v2529_v52  ;;  %v827_v47 = vmul.f32 1.442695, %v769_v0  ;;  %v2530_v6 = vand.u32 2147483647, %v2064_v31  ;;  %v2531_v35 = vand.u32 2147483647, %v2066_v54 }
 0x3e4   : > { %v2237_v16 = vpop.xlane.xlu1 %700  ;;  %v2239_v2 = vpop.xlane.xlu0 %652  ;;  %1537 = vpow2.f32 %v793_v19  ;;  %v753_v51 = vsub.f32 0.0, %v2504_v10  ;;  %v876_v13 = vmul.f32 0.6931472, %v1510_v26  ;;  %v845_v55 = vadd.f32 1.0, %v1516_v34 }
 0x3e5   : > { %v1520_v5 = vpop.eup %1519  ;;  %v984_v30 = vadd.f32 %v952_v61, %v2530_v6  ;;  %v968_v38 = vadd.f32 %v936_v3, %v2531_v35  ;;  %v862_v52 = vadd.f32 1.0, %v1518_v50  ;;  %1539 = vpow2.f32 %v827_v47 }
 0x3e6   : > { %v1522_v62 = vpop.eup %1521  ;;  %1541 = vlog2.f32 %v844_v8  ;;  %v795_v49 = vmul.f32 1.442695, %v753_v51  ;;  %v2503_v42 = vand.u32 2147483647, %v2217_v63  ;;  %v2508_v23 = vand.u32 2147483647, %v2219_v39 }
 0x3e7   : > { %v1524_v11 = vpop.eup %1523  ;;  %v953_v54 = vmul.f32 2.0, %v908_v14  ;;  %v910_v61 = vmul.f32 0.6931472, %v1520_v5  ;;  %1543 = vlog2.f32 %v861_v29  ;;  %v846_v3 = vadd.f32 1.0, %v1522_v62 }
 0x3e8   : > { %v2261_v31 = vpop.xlane.xlu1 %703  ;;  %v2263_v6 = vpop.xlane.xlu0 %655  ;;  %v863_v0 = vadd.f32 1.0, %v1524_v11  ;;  %1545 = vpow2.f32 %v795_v49  ;;  %v770_v26 = vsub.f32 0.0, %v2503_v42  ;;  %v2505_v34 = vand.u32 2147483647, %v2237_v16 }
 0x3e9   : > { %v1526_v19 = vpop.eup %1525  ;;  %v1153_v8 = vrot.slane %v2243_v37, %v2128_v45  ;;  %v1157_v47 = vrot.slane %v984_v30, %v2131_v28  ;;  %v1049_v35 = vrot.slane %v968_v38, %v2131_v28  ;;  %1547 = vlog2.f32 %v845_v55 }
 0x3ea   : > { %v1528_v50 = vpop.eup %1527  ;;  %v1044_v14 = vrot.slane %v967_v53, %v2128_v45  ;;  %1549 = vlog2.f32 %v862_v52  ;;  %v829_v29 = vmul.f32 1.442695, %v770_v26  ;;  %v754_v62 = vsub.f32 0.0, %v2508_v23 }
 0x3eb   : > { %v1530_v5 = vpop.eup %1529  ;;  %v2532_v11 = vand.u32 2147483647, %v2074_v1  ;;  %v937_v42 = vmul.f32 2.0, %v876_v13  ;;  %1551 = vlog2.f32 %v846_v3  ;;  %v847_v37 = vadd.f32 1.0, %v1526_v19 }
 0x3ec   : > { %v1532_v51 = vpop.eup %1531  ;;  %v954_v10 = vmul.f32 2.0, %v910_v61  ;;  %1553 = vlog2.f32 %v863_v0  ;;  %v797_v28 = vmul.f32 1.442695, %v754_v62  ;;  %v771_v45 = vsub.f32 0.0, %v2505_v34  ;;  %v2281_v53 = vpop.xlane.xlu1 %706 }
 0x3ed   : > { %v2277_v49 = vadd.f32 %v953_v54, %v2532_v11  ;;  %v1534_v30 = vpop.eup %1533  ;;  %2533 = vst [vmem:[#allocation16_spill] sm:$0xff] %v2281_v53  ;;  %v2283_v38 = vpop.xlane.xlu0 %658  ;;  %v2286_v52 = vsel %vm1050_vm9, %v1157_v47, %v1153_v8  ;;  %v2289_v1 = vsel %vm1050_vm9, %v1049_v35, %v1044_v14  ;;  %1555 = vpow2.f32 %v829_v29 }
 0x3ee   : > { %2534 = vst [vmem:[#allocation17_spill] sm:$0xff] %v2283_v38  ;;  %v1536_v55 = vpop.eup %1535  ;;  %v2506_v13 = vand.u32 2147483647, %v2239_v2  ;;  %v864_v61 = vadd.f32 1.0, %v1532_v51  ;;  %1557 = vpow2.f32 %v797_v28  ;;  %v831_v3 = vmul.f32 1.442695, %v771_v45 }
 0x3ef   : > { %v1538_v54 = vpop.eup %1537  ;;  %v2507_v19 = vand.u32 2147483647, %v2261_v31  ;;  %v2535_v62 = vand.u32 2147483647, %v2076_v17  ;;  %1559 = vlog2.f32 %v847_v37  ;;  %v2536_v14 = vand.u32 2147483647, %v2083_v58 }
 0x3f0   : > { %v1540_v0 = vpop.eup %1539  ;;  %v755_v47 = vsub.f32 0.0, %v2506_v13  ;;  %v878_v51 = vmul.f32 0.6931472, %v1528_v50  ;;  %1561 = vpow2.f32 %v831_v3  ;;  %v848_v45 = vadd.f32 1.0, %v1538_v54 }
 0x3f1   : > { %v2297_v8 = vadd.f32 %v937_v42, %v2535_v62  ;;  %v1542_v35 = vpop.eup %1541  ;;  %v2303_v29 = vadd.f32 %v954_v10, %v2536_v14  ;;  %v772_v11 = vsub.f32 0.0, %v2507_v19  ;;  %v865_v34 = vadd.f32 1.0, %v1540_v0  ;;  %v2310_v10 = vpop.xlane.xlu1 %709 }
 0x3f2   : > { %v1544_v28 = vpop.eup %1543  ;;  %v799_v17 = vmul.f32 1.442695, %v755_v47  ;;  %v2509_v42 = vand.u32 2147483647, %v2263_v6  ;;  %1563 = vlog2.f32 %v864_v61  ;;  %v2510_v13 = vand.u32 2147483647, %v2281_v53  ;;  %v2312_v50 = vpop.xlane.xlu0 %661 }
 0x3f3   : > { %v1546_v37 = vpop.eup %1545  ;;  %v833_v62 = vmul.f32 1.442695, %v772_v11  ;;  %v2512_v58 = vand.u32 2147483647, %v2283_v38  ;;  %2537 = vst [vmem:[#allocation18_spill] sm:$0xff] %v2312_v50 }
 0x3f4   : > { %v1548_v3 = vpop.eup %1547  ;;  %v912_v14 = vmul.f32 0.6931472, %v1530_v5  ;;  %v880_v19 = vmul.f32 0.6931472, %v1534_v30  ;;  %v849_v23 = vadd.f32 1.0, %v1546_v37  ;;  %1565 = vpow2.f32 %v799_v17 }
 0x3f5   : > { %v1550_v54 = vpop.eup %1549  ;;  %1567 = vpow2.f32 %v833_v62  ;;  %v756_v0 = vsub.f32 0.0, %v2509_v42  ;;  %v773_v61 = vsub.f32 0.0, %v2510_v13  ;;  %v757_v47 = vsub.f32 0.0, %v2512_v58 }
 0x3f6   : > { %v1552_v11 = vpop.eup %1551  ;;  %v914_v26 = vmul.f32 0.6931472, %v1536_v55  ;;  %1569 = vlog2.f32 %v848_v45  ;;  %v2516_v5 = vand.u32 2147483647, %v2310_v10  ;;  %v2517_v30 = vand.u32 2147483647, %v2312_v50 }
 0x3f7   : > { %v2322_v17 = vpop.eup %1553  ;;  %v882_v37 = vmul.f32 0.6931472, %v1542_v35  ;;  %1571 = vlog2.f32 %v865_v34  ;;  %v801_v62 = vmul.f32 1.442695, %v756_v0  ;;  %v835_v42 = vmul.f32 1.442695, %v773_v61 }
 0x3f8   : > { %v1556_v24 = vpop.eup %1555  ;;  %v938_v13 = vmul.f32 2.0, %v878_v51  ;;  %v955_v48 = vmul.f32 2.0, %v912_v14  ;;  %1573 = vlog2.f32 %v849_v23  ;;  %v774_v58 = vsub.f32 0.0, %v2516_v5 }
 0x3f9   : > { %v1558_v55 = vpop.eup %1557  ;;  %v866_v45 = vadd.f32 1.0, %v1556_v24  ;;  %1575 = vpow2.f32 %v801_v62  ;;  %v803_v38 = vmul.f32 1.442695, %v757_v47  ;;  %v758_v12 = vsub.f32 0.0, %v2517_v30 }
 0x3fa   : > { %v1560_v53 = vpop.eup %1559  ;;  %v939_v35 = vmul.f32 2.0, %v880_v19  ;;  %v956_v34 = vmul.f32 2.0, %v914_v26  ;;  %v850_v0 = vadd.f32 1.0, %v1558_v55  ;;  %1577 = vpow2.f32 %v835_v42 }
 0x3fb   : > { %v1562_v61 = vpop.eup %1561  ;;  %v940_v51 = vmul.f32 2.0, %v882_v37  ;;  %v916_v14 = vmul.f32 0.6931472, %v1544_v28  ;;  %1579 = vlog2.f32 %v866_v45  ;;  %v837_v23 = vmul.f32 1.442695, %v774_v58 }
 0x3fc   : > { %v884_v5 = vmul.f32 0.6931472, %v1548_v3  ;;  %1581 = vlog2.f32 %v850_v0  ;;  %v867_v24 = vadd.f32 1.0, %v1562_v61  ;;  %v805_v62 = vmul.f32 1.442695, %v758_v12  ;;  %v1564_v47 = vpop.eup %1563 }
 0x3fd   : > { %v1056_v30 = vrot.slane %v2297_v8, %v2135_v43  ;;  %v1167_v19 = vrot.slane %v2303_v29, %v2139_v46  ;;  %v918_v26 = vmul.f32 0.6931472, %v1550_v54  ;;  %1583 = vpow2.f32 %v803_v38 }
 0x3fe   : > { %v1566_v42 = vpop.eup %1565  ;;  %v2538_v37 = vand.u32 2147483647, %v2085_v59  ;;  %v2539_v58 = vand.u32 2147483647, %v2090_v20  ;;  %v2540_v3 = vand.u32 2147483647, %v2092_v4  ;;  %1585 = vlog2.f32 %v867_v24 }
 0x3ff   : > { %v1568_v12 = vpop.eup %1567  ;;  %v2541_v0 = vand.u32 2147483647, %v2097_v32  ;;  %v957_v61 = vmul.f32 2.0, %v916_v14  ;;  %v851_v50 = vadd.f32 1.0, %v1566_v42  ;;  %1587 = vpow2.f32 %v837_v23 }
 0x400   : > { %v970_v28 = vadd.f32 %v938_v13, %v2538_v37  ;;  %v987_v55 = vadd.f32 %v955_v48, %v2539_v58  ;;  %v971_v45 = vadd.f32 %v939_v35, %v2540_v3  ;;  %v1570_v29 = vpop.eup %1569  ;;  %v2542_v38 = vand.u32 2147483647, %v2099_v33 }
 0x401   : > { %v988_v8 = vadd.f32 %v956_v34, %v2541_v0  ;;  %v941_v59 = vmul.f32 2.0, %v884_v5  ;;  %v868_v13 = vadd.f32 1.0, %v1568_v12  ;;  %1589 = vpow2.f32 %v805_v62  ;;  %v1572_v20 = vpop.eup %1571 }
 0x402   : > { %v972_v54 = vadd.f32 %v940_v51, %v2542_v38  ;;  %v2543_v48 = vrot.slane %v2277_v49, %v2135_v43  ;;  %v958_v35 = vmul.f32 2.0, %v918_v26  ;;  %v886_v32 = vmul.f32 0.6931472, %v1552_v11  ;;  %v1574_v34 = vpop.eup %1573 }
 0x403   : > { %1591 = vlog2.f32 %v851_v50  ;;  %v1058_v14 = vsel %vm1057_vm10, %v1056_v30, %v2289_v1  ;;  %v1063_v33 = vrot.slane %v970_v28, %v2139_v46  ;;  %v1172_v5 = vrot.slane %v987_v55, %v2152_v60  ;;  %v1576_v51 = vpop.eup %1575 }
 0x404   : > { %v1163_v4 = vsel %vm1057_vm10, %v2543_v48, %v2286_v52  ;;  %1593 = vlog2.f32 %v868_v13  ;;  %v1070_v24 = vrot.slane %v971_v45, %v2152_v60  ;;  %v1177_v43 = vrot.slane %v988_v8, %v2156_v21  ;;  %v1578_v52 = vpop.eup %1577 }
 0x405   : > { %v1168_v23 = vsel %vm1064_vm11, %v1167_v19, %v1163_v4  ;;  %v920_v49 = vmul.f32 0.6931472, %v2322_v17  ;;  %v1077_v50 = vrot.slane %v972_v54, %v2156_v21  ;;  %v2544_v1 = vand.u32 2147483647, %v2107_v7  ;;  %v1580_v26 = vpop.eup %1579 }
 0x406   : > { %v2545_v46 = vand.u32 2147483647, %v2109_v36  ;;  %v852_v62 = vadd.f32 1.0, %v1576_v51  ;;  %v2546_v19 = vand.u32 2147483647, %v2122_v44  ;;  %v942_v42 = vmul.f32 2.0, %v886_v32  ;;  %v1582_v58 = vpop.eup %1581 }
 0x407   : > { %v989_v11 = vadd.f32 %v957_v61, %v2544_v1  ;;  %v888_v37 = vmul.f32 0.6931472, %v1560_v53  ;;  %v869_v28 = vadd.f32 1.0, %v1578_v52  ;;  %v1065_v17 = vsel %vm1064_vm11, %v1063_v33, %v1058_v14  ;;  %v1584_v7 = vpop.eup %1583 }
 0x408   : > { %v973_v30 = vadd.f32 %v941_v59, %v2545_v46  ;;  %v990_v60 = vadd.f32 %v958_v35, %v2546_v19  ;;  %v1173_v21 = vsel %vm1071_vm12, %v1172_v5, %v1168_v23  ;;  %v922_v55 = vmul.f32 0.6931472, %v1564_v47  ;;  %v1586_v12 = vpop.eup %1585 }
 0x409   : > { %1595 = vlog2.f32 %v852_v62  ;;  %v1072_v36 = vsel %vm1071_vm12, %v1070_v24, %v1065_v17  ;;  %v1178_v3 = vsel %vm1078_vm13, %v1177_v43, %v1173_v21  ;;  %v959_v45 = vmul.f32 2.0, %v920_v49  ;;  %v1588_v61 = vpop.eup %1587 }
 0x40a   : > { %1597 = vlog2.f32 %v869_v28  ;;  %v1079_v44 = vsel %vm1078_vm13, %v1077_v50, %v1072_v36  ;;  %v1182_v53 = vrot.slane %v989_v11, %v2183_v22  ;;  %v890_v0 = vmul.f32 0.6931472, %v1570_v29  ;;  %v2552_v36 = vld [vmem:[#allocation8_spill] sm:$0xff] }
 0x40b   : > { %v853_v8 = vadd.f32 1.0, %v1584_v7  ;;  %v1084_v38 = vrot.slane %v973_v30, %v2183_v22  ;;  %v1187_v47 = vrot.slane %v990_v60, %v2188_v56  ;;  %v2547_v54 = vand.u32 2147483647, %v2124_v27  ;;  %v1590_v48 = vpop.eup %1589 }
 0x40c   : > { %v943_v13 = vmul.f32 2.0, %v888_v37  ;;  %v960_v4 = vmul.f32 2.0, %v922_v55  ;;  %v924_v35 = vmul.f32 0.6931472, %v1572_v20  ;;  %v870_v32 = vadd.f32 1.0, %v1588_v61 }
 0x40d   : > { %v974_v59 = vadd.f32 %v942_v42, %v2547_v54  ;;  %1599 = vlog2.f32 %v853_v8  ;;  %v1592_v14 = vpop.eup %1591  ;;  %v2548_v33 = vand.u32 2147483647, %v2147_v57  ;;  %v892_v29 = vmul.f32 0.6931472, %v1574_v34 }
 0x40e   : > { %v926_v51 = vmul.f32 0.6931472, %v1580_v26  ;;  %v854_v23 = vadd.f32 1.0, %v1590_v48  ;;  %v1594_v22 = vpop.eup %1593  ;;  %v944_v24 = vmul.f32 2.0, %v890_v0  ;;  %v894_v43 = vmul.f32 0.6931472, %v1582_v58 }
 0x40f   : > { %v991_v5 = vadd.f32 %v959_v45, %v2548_v33  ;;  %v928_v49 = vmul.f32 0.6931472, %v1586_v12  ;;  %1601 = vlog2.f32 %v870_v32  ;;  %v2549_v27 = vand.u32 2147483647, %v2149_v18 }
 0x410   : > { %v896_v50 = vmul.f32 0.6931472, %v1592_v14  ;;  %v930_v20 = vmul.f32 0.6931472, %v1594_v22  ;;  %1603 = vlog2.f32 %v854_v23  ;;  %v1183_v1 = vsel %vm1085_vm14, %v1182_v53, %v1178_v3 }
 0x411   : > { %v975_v52 = vadd.f32 %v943_v13, %v2549_v27  ;;  %v1091_v57 = vrot.slane %v974_v59, %v2188_v56  ;;  %v2550_v11 = vand.u32 2147483647, %v2166_v40  ;;  %v961_v46 = vmul.f32 2.0, %v924_v35 }
 0x412   : > { %v1086_v30 = vsel %vm1085_vm14, %v1084_v38, %v1079_v44  ;;  %v1192_v62 = vrot.slane %v991_v5, %v2191_v25  ;;  %v945_v26 = vmul.f32 2.0, %v892_v29  ;;  %v962_v19 = vmul.f32 2.0, %v926_v51  ;;  %v2560_v29 = vld [vmem:[#allocation9_spill] sm:$0xff] }
 0x413   : > { %v992_v34 = vadd.f32 %v960_v4, %v2550_v11  ;;  %v1596_v18 = vpop.eup %1595  ;;  %v1188_v60 = vsel %vm1092_vm15, %v1187_v47, %v1183_v1  ;;  %v2551_v42 = vand.u32 2147483647, %v2168_v41  ;;  %v946_v28 = vmul.f32 2.0, %v894_v43  ;;  %v2565_v1 = vld [vmem:[#allocation11_spill] sm:$0xff] }
 0x414   : > { %v963_v56 = vmul.f32 2.0, %v928_v49  ;;  %v1598_v58 = vpop.eup %1597  ;;  %v1098_v40 = vrot.slane %v975_v52, %v2191_v25  ;;  %v947_v17 = vmul.f32 2.0, %v896_v50  ;;  %v964_v21 = vmul.f32 2.0, %v930_v20 }
 0x415   : > { %v976_v37 = vadd.f32 %v944_v24, %v2551_v42  ;;  %v898_v55 = vmul.f32 0.6931472, %v1596_v18  ;;  %v1093_v7 = vsel %vm1092_vm15, %v1091_v57, %v1086_v30  ;;  %v1197_v3 = vrot.slane %v992_v34, %v2552_v36  ;;  %v2566_v34 = vld [vmem:[#allocation12_spill] sm:$0xff]  ;;  %v2567_v30 = vld [vmem:[#allocation17_spill] sm:$0xff] }
 0x416   : > { %v2553_v45 = vand.u32 2147483647, %v2193_v9  ;;  %v932_v41 = vmul.f32 0.6931472, %v1598_v58  ;;  %v1193_v44 = vsel %vm1099_vm0, %v1192_v62, %v1188_v60  ;;  %v2554_v53 = vand.u32 2147483647, %v2195_v15 }
 0x417   : > { %v2555_v25 = vand.u32 2147483647, %v2217_v63  ;;  %v948_v61 = vmul.f32 2.0, %v898_v55  ;;  %v1600_v38 = vpop.eup %1599  ;;  %v1105_v47 = vrot.slane %v976_v37, %v2552_v36  ;;  %v2556_v54 = vand.u32 2147483647, %v2219_v39  ;;  %v2569_v42 = vld [vmem:[#allocation13_spill] sm:$0xff] }
 0x418   : > { %v993_v12 = vadd.f32 %v961_v46, %v2553_v45  ;;  %v977_v0 = vadd.f32 %v945_v26, %v2554_v53  ;;  %v2557_v9 = vand.u32 2147483647, %v2237_v16  ;;  %v965_v48 = vmul.f32 2.0, %v932_v41  ;;  %v2562_v16 = vld [vmem:[#allocation16_spill] sm:$0xff]  ;;  %v2571_v36 = vld [vmem:[#allocation18_spill] sm:$0xff] }
 0x419   : > { %v994_v8 = vadd.f32 %v962_v19, %v2555_v25  ;;  %v978_v59 = vadd.f32 %v946_v28, %v2556_v54  ;;  %v1100_v4 = vsel %vm1099_vm0, %v1098_v40, %v1093_v7  ;;  %v2558_v15 = vand.u32 2147483647, %v2239_v2  ;;  %v1602_v33 = vpop.eup %1601  ;;  %v2564_v2 = vld [vmem:[#allocation10_spill] sm:$0xff] }
 0x41a   : > { %v995_v13 = vadd.f32 %v963_v56, %v2557_v9  ;;  %v2559_v63 = vand.u32 2147483647, %v2261_v31  ;;  %v900_v14 = vmul.f32 0.6931472, %v1600_v38  ;;  %v1198_v5 = vsel %vm1106_vm1, %v1197_v3, %v1193_v44  ;;  %v1604_v43 = vpop.eup %1603  ;;  %v2573_v44 = vld [vmem:[#allocation14_spill] sm:$0xff] }
 0x41b   : > { %v979_v35 = vadd.f32 %v947_v17, %v2558_v15  ;;  %v1202_v51 = vrot.slane %v993_v12, %v2560_v29  ;;  %v2561_v39 = vand.u32 2147483647, %v2263_v6  ;;  %v2563_v22 = vand.u32 2147483647, %v2562_v16 }
 0x41c   : > { %v996_v32 = vadd.f32 %v964_v21, %v2559_v63  ;;  %v1112_v49 = vrot.slane %v977_v0, %v2560_v29  ;;  %v1207_v27 = vrot.slane %v994_v8, %v2564_v2  ;;  %v949_v52 = vmul.f32 2.0, %v900_v14  ;;  %v2574_v8 = vld [vmem:[#allocation15_spill] sm:$0xff] }
 0x41d   : > { %v980_v23 = vadd.f32 %v948_v61, %v2561_v39  ;;  %v997_v24 = vadd.f32 %v965_v48, %v2563_v22  ;;  %v934_v31 = vmul.f32 0.6931472, %v1602_v33  ;;  %v1107_v50 = vsel %vm1106_vm1, %v1105_v47, %v1100_v4  ;;  %v1237_v14 = vld [vmem:[#allocation4] sm:$0x1] }
 0x41e   : > { %v1119_v20 = vrot.slane %v978_v59, %v2564_v2  ;;  %v1212_v57 = vrot.slane %v995_v13, %v2565_v1  ;;  %v902_v11 = vmul.f32 0.6931472, %v1604_v43  ;;  %v1126_v6 = vrot.slane %v979_v35, %v2565_v1 }
 0x41f   : > { %v1217_v46 = vrot.slane %v996_v32, %v2566_v34  ;;  %v2568_v62 = vand.u32 2147483647, %v2567_v30  ;;  %v966_v19 = vmul.f32 2.0, %v934_v31  ;;  %v1203_v18 = vsel %vm1113_vm2, %v1202_v51, %v1198_v5 }
 0x420   : > { %v1133_v60 = vrot.slane %v980_v23, %v2566_v34  ;;  %v1222_v37 = vrot.slane %v997_v24, %v2569_v42  ;;  %v950_v28 = vmul.f32 2.0, %v902_v11  ;;  %v1114_v56 = vsel %vm1113_vm2, %v1112_v49, %v1107_v50 }
 0x421   : > { %v981_v26 = vadd.f32 %v949_v52, %v2568_v62  ;;  %v1208_v58 = vsel %vm1120_vm3, %v1207_v27, %v1203_v18  ;;  %v2570_v17 = vand.u32 2147483647, %v2310_v10  ;;  %v1121_v55 = vsel %vm1120_vm3, %v1119_v20, %v1114_v56 }
 0x422   : > { %v1213_v7 = vsel %vm1127_vm4, %v1212_v57, %v1208_v58  ;;  %v2572_v3 = vand.u32 2147483647, %v2571_v36  ;;  %v1128_v12 = vsel %vm1127_vm4, %v1126_v6, %v1121_v55  ;;  %vm1008_vm9 = vcmp.lt.s32.totalorder %v2574_v8, 600 }
 0x423   : > { %v1140_v40 = vrot.slane %v981_v26, %v2569_v42  ;;  %v998_v21 = vadd.f32 %v966_v19, %v2570_v17  ;;  %v1218_v41 = vsel %vm1134_vm5, %v1217_v46, %v1213_v7  ;;  %v1135_v0 = vsel %vm1134_vm5, %v1133_v60, %v1128_v12 }
 0x424   : > { %v982_v45 = vadd.f32 %v950_v28, %v2572_v3  ;;  %v1223_v10 = vsel %vm1141_vm6, %v1222_v37, %v1218_v41  ;;  %vm1233_vm10 = vcmask 1041408   ;;  %vm1246_vm11 = vcmask 0  }
 0x425   : > { %v1227_v53 = vrot.slane %v998_v21, %v2573_v44  ;;  %v1142_v61 = vsel %vm1141_vm6, %v1140_v40, %v1135_v0 }
 0x426   : > { %v1147_v25 = vrot.slane %v982_v45, %v2573_v44 }
 0x427   : > { %v1228_v38 = vsel %vm1148_vm7, %v1227_v53, %v1223_v10 }
 0x428   : > { %v1149_v47 = vsel %vm1148_vm7, %v1147_v25, %v1142_v61 }
 0x429   : > { %v1230_v54 = vsel %vm1229_vm8, %v1228_v38, %v1149_v47 }
 0x42a   : > { %v1232_v59 = vsel %vm1008_vm9, %v1230_v54, 0.0 }
 0x42b   : > { %v1234_v9 = vsel %vm1233_vm10, %v1232_v59, 0.0 }
 0x42c   : > { %1235 = vadd.xlane.f32.xlu0 %v1234_v9 }
 0x4b9   : > { %v1236_v13 = vpop.xlane.xlu0 %1235 }
 0x4ba   : > { %v1238_v48 = vsel %vm1233_vm10, %v1236_v13, 0.0 }
 0x4bb   : > { %v1239_v4 = vrot.slane %v1238_v48, 4 }
 0x4bd   : > { %v1240_v15 = vadd.f32 %v1239_v4, %v1238_v48 }
 0x4bf   : > { %v1241_v35 = vrot.slane %v1240_v15, 2 }
 0x4c1   : > { %v1242_v63 = vadd.f32 %v1241_v35, %v1240_v15 }
 0x4c3   : > { %v1243_v32 = vrot.slane %v1242_v63, 1 }
 0x4c5   : > { %v1244_v33 = vadd.f32 %v1243_v32, %v1242_v63 }
 0x4c7   : > { %v1245_v5 = vadd.f32 %v1244_v33, %v1237_v14 }
 0x4c9   : > { %1247 = vst.msk [vmem:[#allocation4] sm:$0x1] %vm1246_vm11, %v1245_v5 }
 0x4ca PF: > { %p1248_p13 = scmp.eq.s32.totalorder %s1643_s15, 2 }
 0x4cc   : > { %p1249_p0 = pnand %p1248_p13, %p320_p10 }
 0x4ce   : > { %1252 = sbr.rel (%p1249_p0) target bundleno = 1286 (0x506), region = 56 }
 0x4d0   : > { %v1253_v29 = vld [vmem:[#allocation4] sm:$0x1] (!%p1249_p0) }
 0x4d1   : > { %1420 = vpush (!%p1249_p0), %v1253_v29 }
 0x502   : > { %s1421_s26 = spop %1420 }
 0x503   : > { %s1256_s27 = smul.f32 0.0016666667, %s1421_s26 }
 0x505   : > { %1258 = sst [smem:[#allocation5]] %s1256_s27 }
 0x506 PF: > { %p1426_p1 = scmp.eq.s32.totalorder %s1316_s20, 5  ;;  %s1605_s30 = scalar_lea.hbm %s2476_s4, 16 }
 0x507   : > { %p1606_p2 = scmp.ne.s32.totalorder %s2476_s4, %s1605_s30  ;;  %p1611_p5 = scmp.lt.u32.totalorder %s1605_s30, %s2476_s4 }
 0x509   : > { %p1607_p3 = pnand %p1606_p2, %p1426_p1 }
 0x50b   : > { %p1608_p4 = pneg %p1607_p3 }
 0x50d   : > { %p1613_p6 = pnand %p1611_p5, %p1608_p4 }
 0x50f   : > { %1616 = shalt.err (!%p1613_p6)
}
 0x510   : > { %s1665_s7 = smov [#allocation5]  }
 0x511   : > { %1423 = dma.smem_to_hbm (%p1426_p1), %s1665_s7, 16, %s2476_s4, [#allocation6]  }
 0x512   : > { %1638 = dma.done.wait (%p1426_p1), [#allocation6], 16  }
 0x513   : > { %1640 = vsyncadd (%p1426_p1), [#allocation6], 4294967280 }
 0x514   : > { %1272 = sfence }
 0x515 PF: > { %s15_s19 = sadd.s32 1, %s1659_s19   ;;  %s2575_s15 = smov %s1651_s17 }
 0x516   : > { %p12_p7 = scmp.ge.s32.totalorder %s15_s19, 8   ;;  %s2576_s16 = smov %s1655_s18 }
 0x517   : > { %s2577_s17 = smov %s2580_s21  ;;  %s2578_s18 = smov %s2584_s22 }
 0x518   :  { %14 = sbr.rel (!%p12_p7) target bundleno = 3 (0x3), region = 84 }
 0x51f   :  { %1278 = vsyncpa [#allocation6], 1 }
 0x520   :  { %1280 = vsyncpa [#allocation6 + $0x1], 1 }

</bundles_post_ra>
